<compile_context>
chip_gen: v6e
topology: v6e:2x2x1
jax: 0.10.0
libtpu: 0.0.40
codegen_flags: <defaults>
</compile_context>

<pallas_src>
import jax
import jax.numpy as jnp
from jax.experimental import pallas as pl
from jax.experimental.pallas import tpu as pltpu


def _lstm_chunk_kernel(xg_ref,        # (Tc, Bp, 4H) f32  precomputed x@W_ih0 + b0, gate order [i,f,o,g]
                       whh0_ref,      # (H, 4H)  bf16
                       w1_ref,        # (2H, 4H) bf16  stacked [W_ih1; W_hh1]
                       b1_ref,        # (1, 4H)  f32
                       h1_out_ref,    # (Bp, H)  f32   h1 at the last timestep
                       h0, c0, h1, c1):  # (Bp, H) f32 VMEM scratch, carried across chunks
    step = pl.program_id(0)
    H = h0.shape[-1]
    Tc = xg_ref.shape[0]

    @pl.when(step == 0)
    def _():
        h0[...] = jnp.zeros_like(h0)
        c0[...] = jnp.zeros_like(c0)
        h1[...] = jnp.zeros_like(h1)
        c1[...] = jnp.zeros_like(c1)

    w_hh0 = whh0_ref[...]      # bf16, resident
    w_1 = w1_ref[...]          # bf16, resident
    b1 = b1_ref[...]           # f32

    def activate(gates, c_prev):
        # gate order [i, f, o, g]: one sigmoid over 3H, one tanh over H
        sig = jax.nn.sigmoid(gates[:, :3 * H])
        g = jnp.tanh(gates[:, 3 * H:])
        i = sig[:, :H]
        f = sig[:, H:2 * H]
        o = sig[:, 2 * H:3 * H]
        c_new = f * c_prev + i * g
        h_new = o * jnp.tanh(c_new)
        return h_new, c_new

    def body(t, carry):
        h0v, c0v, h1v, c1v = carry
        # Layer 0: x-projection precomputed -> only the recurrent matmul remains.
        g0 = xg_ref[t] + jnp.dot(h0v.astype(w_hh0.dtype), w_hh0,
                                 preferred_element_type=jnp.float32)
        h0v, c0v = activate(g0, c0v)
        # Layer 1: fused [x=h0, h1] @ [W_ih1; W_hh1] -> single MXU pass per step.
        # (inter-layer dropout is identity in inference mode)
        xin = jnp.concatenate([h0v, h1v], axis=-1).astype(w_1.dtype)
        g1 = jnp.dot(xin, w_1, preferred_element_type=jnp.float32) + b1
        h1v, c1v = activate(g1, c1v)
        return (h0v, c0v, h1v, c1v)

    # Unrolled inner time loop: lets the scheduler overlap layer-0 matmul of step
    # t+1 with layer-1 activations of step t (different VLIW units).
    h0v, c0v, h1v, c1v = jax.lax.fori_loop(
        0, Tc, body, (h0[...], c0[...], h1[...], c1[...]), unroll=True)

    # Write state exactly once per chunk.
    h0[...] = h0v
    c0[...] = c0v
    h1[...] = h1v
    c1[...] = c1v

    @pl.when(step == pl.num_programs(0) - 1)
    def _():
        h1_out_ref[...] = h1v


def song_lstm_forward(x, params, *, time_chunk=8):
    """x: (B, T, I) float32.  Returns logits (B, O)."""
    B, T, I = x.shape
    H = params["w_hh0"].shape[0]
    O = params["w_fc"].shape[1]

    # --- gate-column reorder: PyTorch [i, f, g, o] -> kernel [i, f, o, g] ---
    def reorder(w):
        return jnp.concatenate(
            [w[..., :2 * H], w[..., 3 * H:], w[..., 2 * H:3 * H]], axis=-1)

    w_ih0 = reorder(params["w_ih0"]).astype(jnp.bfloat16)      # (I, 4H)
    w_hh0 = reorder(params["w_hh0"]).astype(jnp.bfloat16)      # (H, 4H)
    b0 = reorder(params["b0"]).astype(jnp.float32)             # (1, 4H)
    w1 = jnp.concatenate([reorder(params["w_ih1"]),
                          reorder(params["w_hh1"])], axis=0).astype(jnp.bfloat16)  # (2H, 4H)
    b1 = reorder(params["b1"]).astype(jnp.float32)             # (1, 4H)

    # --- pad batch to a sublane multiple (8) so (B,H) state fills vregs ---
    Bp = max(8, ((B + 7) // 8) * 8)
    x_pad = jnp.pad(x.astype(jnp.float32), ((0, Bp - B), (0, 0), (0, 0)))

    # --- hoisted layer-0 input projection: one big GEMM over all timesteps ---
    x_tbi = jnp.transpose(x_pad, (1, 0, 2)).astype(jnp.bfloat16)        # (T, Bp, I)
    xg0 = (jnp.dot(x_tbi.reshape(T * Bp, I), w_ih0,
                   preferred_element_type=jnp.float32)
           .reshape(T, Bp, 4 * H) + b0)                                  # (T, Bp, 4H) f32

    # --- time chunking: largest divisor of T not exceeding time_chunk ---
    Tc = max(d for d in range(1, min(T, time_chunk) + 1) if T % d == 0)
    num_chunks = T // Tc

    # --- VMEM budget sized to the actual footprint (never below the default) ---
    xg_block_bytes = Tc * Bp * 4 * H * 4
    weight_bytes = (H * 4 * H) * 2 + (2 * H * 4 * H) * 2 + 4 * H * 4
    state_bytes = 4 * Bp * H * 4
    out_bytes = Bp * H * 4
    vmem_limit = max(16 * 1024 * 1024,
                     2 * xg_block_bytes + weight_bytes + state_bytes
                     + 2 * out_bytes + (2 << 20))

    resident = pl.BlockSpec(memory_space=pltpu.MemorySpace.VMEM)  # single-resident weights

    h1_last = pl.pallas_call(
        _lstm_chunk_kernel,
        out_shape=jax.ShapeDtypeStruct((Bp, H), jnp.float32),
        grid=(num_chunks,),
        in_specs=[
            pl.BlockSpec((Tc, Bp, 4 * H), lambda i: (i, 0, 0)),  # pre-gates, pipelined per chunk
            resident,   # w_hh0
            resident,   # stacked layer-1 weights
            resident,   # b1
        ],
        out_specs=pl.BlockSpec((Bp, H), lambda i: (0, 0)),
        scratch_shapes=[
            pltpu.VMEM((Bp, H), jnp.float32),
            pltpu.VMEM((Bp, H), jnp.float32),
            pltpu.VMEM((Bp, H), jnp.float32),
            pltpu.VMEM((Bp, H), jnp.float32),
        ],
        compiler_params=pltpu.CompilerParams(
            dimension_semantics=("arbitrary",),
            vmem_limit_bytes=int(vmem_limit)),
    )(xg0, w_hh0, w1, b1)

    # dropout(out[:, -1, :]) is identity in inference mode; fc as a plain XLA matmul
    # (frees (H,O) VMEM residency and avoids a lane-sparse in-kernel output store).
    h1_real = h1_last[:B]
    logits = jnp.dot(h1_real, params["w_fc"],
                     preferred_element_type=jnp.float32) + params["b_fc"]
    return logits


def init_params(key, input_size, hidden_size, output_size):
    """Deterministic init mirroring PyTorch uniform(-1/sqrt(H), 1/sqrt(H)).

    Weights are stored pre-transposed, PyTorch gate order [i, f, g, o]:
      w_ih*: (in_dim, 4H), w_hh*: (H, 4H), b*: (1, 4H) (= b_ih + b_hh), w_fc: (H, O).
    """
    H, I, O = hidden_size, input_size, output_size
    k = 1.0 / jnp.sqrt(jnp.float32(H))
    keys = jax.random.split(key, 12)
    u = lambda kk, shape: jax.random.uniform(kk, shape, jnp.float32, -k, k)

    w_ih0 = u(keys[0], (I, 4 * H))
    w_hh0 = u(keys[1], (H, 4 * H))
    b0 = (u(keys[2], (4 * H,)) + u(keys[3], (4 * H,))).reshape(1, 4 * H)
    w_ih1 = u(keys[4], (H, 4 * H))
    w_hh1 = u(keys[5], (H, 4 * H))
    b1 = (u(keys[6], (4 * H,)) + u(keys[7], (4 * H,))).reshape(1, 4 * H)
    w_fc = jax.random.uniform(keys[8], (H, O), jnp.float32, -k, k)
    b_fc = jax.random.uniform(keys[9], (1, O), jnp.float32, -k, k)
    return dict(w_ih0=w_ih0, w_hh0=w_hh0, b0=b0,
                w_ih1=w_ih1, w_hh1=w_hh1, b1=b1,
                w_fc=w_fc, b_fc=b_fc)


def _reference_forward(x, p):
    """Pure-JAX reference (same bf16-operand / f32-accumulation choices as the kernel)."""
    B, T, I = x.shape
    H = p["w_hh0"].shape[0]
    bf = lambda a: a.astype(jnp.bfloat16)

    def cell(x_in, h, c, w_ih, w_hh, b):
        gates = (jnp.dot(bf(x_in), bf(w_ih), preferred_element_type=jnp.float32)
                 + jnp.dot(bf(h), bf(w_hh), preferred_element_type=jnp.float32)
                 + b)
        i = jax.nn.sigmoid(gates[:, 0:H])
        f = jax.nn.sigmoid(gates[:, H:2 * H])
        g = jnp.tanh(gates[:, 2 * H:3 * H])
        o = jax.nn.sigmoid(gates[:, 3 * H:4 * H])
        c = f * c + i * g
        h = o * jnp.tanh(c)
        return h, c

    h0 = c0 = h1 = c1 = jnp.zeros((B, H), jnp.float32)
    for t in range(T):
        h0, c0 = cell(x[:, t, :], h0, c0, p["w_ih0"], p["w_hh0"], p["b0"])
        h1, c1 = cell(h0, h1, c1, p["w_ih1"], p["w_hh1"], p["b1"])
    return jnp.dot(h1, p["w_fc"], preferred_element_type=jnp.float32) + p["b_fc"]


if __name__ == "__main__":
    # batch=2, seq=16, input_size=16, hidden=32, output=16
    B, T, I, H, O = 2, 16, 16, 32, 16

    key = jax.random.PRNGKey(0)
    kx, kp = jax.random.split(key)
    x = jax.random.normal(kx, (B, T, I), jnp.float32)
    params = init_params(kp, I, H, O)

    out = song_lstm_forward(x, params, time_chunk=8)
    out = jax.block_until_ready(out)

    ref = _reference_forward(x, params)
    assert out.shape == (B, O)
    assert jnp.allclose(out, ref, atol=5e-3, rtol=5e-3), "mismatch vs reference"

    print("KERNEL_OK")
</pallas_src>

<mosaic_0001>
module attributes {stable_mosaic.version = 11 : i64} {
  func.func @_lstm_chunk_kernel(%arg0: i32, %arg1: memref<8x8x128xf32, #tpu.memory_space<vmem>>, %arg2: memref<32x128xbf16, #tpu.memory_space<vmem>>, %arg3: memref<64x128xbf16, #tpu.memory_space<vmem>>, %arg4: memref<1x128xf32, #tpu.memory_space<vmem>>, %arg5: memref<8x32xf32, #tpu.memory_space<vmem>>, %arg6: memref<8x32xf32, #tpu.memory_space<vmem>>, %arg7: memref<8x32xf32, #tpu.memory_space<vmem>>, %arg8: memref<8x32xf32, #tpu.memory_space<vmem>>, %arg9: memref<8x32xf32, #tpu.memory_space<vmem>>) attributes {dimension_semantics = [#tpu.dimension_semantics<arbitrary>], iteration_bounds = array<i64: 2>, scalar_prefetch = 0 : i64, scratch_operands = 4 : i64, tpu.core_type = #tpu.core_type<tc>, window_params = [{transform_indices = @transform_0, window_bounds = array<i64: 8, 8, 128>}, {pipeline_mode = #tpu.pipeline_mode<synchronous>, transform_indices = @transform_1, window_bounds = array<i64: 32, 128>}, {pipeline_mode = #tpu.pipeline_mode<synchronous>, transform_indices = @transform_2, window_bounds = array<i64: 64, 128>}, {pipeline_mode = #tpu.pipeline_mode<synchronous>, transform_indices = @transform_3, window_bounds = array<i64: 1, 128>}, {pipeline_mode = #tpu.pipeline_mode<synchronous>, transform_indices = @transform_4, window_bounds = array<i64: 8, 32>}]} {
    %c0_i32 = arith.constant 0 : i32
    %0 = arith.cmpi eq, %arg0, %c0_i32 : i32
    %1 = arith.extui %0 : i1 to i32
    %c0_i32_0 = arith.constant 0 : i32
    %2 = arith.cmpi ne, %1, %c0_i32_0 : i32
    scf.if %2 {
      %cst_72 = arith.constant 0.000000e+00 : f32
      %361 = vector.broadcast %cst_72 : f32 to vector<8x32xf32>
      %c0_73 = arith.constant 0 : index
      %c0_74 = arith.constant 0 : index
      %362 = vector.load %arg6[%c0_73, %c0_74] : memref<8x32xf32, #tpu.memory_space<vmem>>, vector<8x32xf32>
      tpu.vector_store %arg6[%c0_73, %c0_74], %361 {strides = array<i32>} : memref<8x32xf32, #tpu.memory_space<vmem>>, vector<8x32xf32>,
      %cst_75 = arith.constant 0.000000e+00 : f32
      %363 = vector.broadcast %cst_75 : f32 to vector<8x32xf32>
      %c0_76 = arith.constant 0 : index
      %c0_77 = arith.constant 0 : index
      %364 = vector.load %arg7[%c0_76, %c0_77] : memref<8x32xf32, #tpu.memory_space<vmem>>, vector<8x32xf32>
      tpu.vector_store %arg7[%c0_76, %c0_77], %363 {strides = array<i32>} : memref<8x32xf32, #tpu.memory_space<vmem>>, vector<8x32xf32>,
      %cst_78 = arith.constant 0.000000e+00 : f32
      %365 = vector.broadcast %cst_78 : f32 to vector<8x32xf32>
      %c0_79 = arith.constant 0 : index
      %c0_80 = arith.constant 0 : index
      %366 = vector.load %arg8[%c0_79, %c0_80] : memref<8x32xf32, #tpu.memory_space<vmem>>, vector<8x32xf32>
      tpu.vector_store %arg8[%c0_79, %c0_80], %365 {strides = array<i32>} : memref<8x32xf32, #tpu.memory_space<vmem>>, vector<8x32xf32>,
      %cst_81 = arith.constant 0.000000e+00 : f32
      %367 = vector.broadcast %cst_81 : f32 to vector<8x32xf32>
      %c0_82 = arith.constant 0 : index
      %c0_83 = arith.constant 0 : index
      %368 = vector.load %arg9[%c0_82, %c0_83] : memref<8x32xf32, #tpu.memory_space<vmem>>, vector<8x32xf32>
      tpu.vector_store %arg9[%c0_82, %c0_83], %367 {strides = array<i32>} : memref<8x32xf32, #tpu.memory_space<vmem>>, vector<8x32xf32>,
    } else {
    }
    %c0 = arith.constant 0 : index
    %c0_1 = arith.constant 0 : index
    %3 = vector.load %arg2[%c0, %c0_1] : memref<32x128xbf16, #tpu.memory_space<vmem>>, vector<32x128xbf16>
    %c0_2 = arith.constant 0 : index
    %c0_3 = arith.constant 0 : index
    %4 = vector.load %arg3[%c0_2, %c0_3] : memref<64x128xbf16, #tpu.memory_space<vmem>>, vector<64x128xbf16>
    %c0_4 = arith.constant 0 : index
    %c0_5 = arith.constant 0 : index
    %5 = vector.load %arg4[%c0_4, %c0_5] : memref<1x128xf32, #tpu.memory_space<vmem>>, vector<1x128xf32>
    %c0_6 = arith.constant 0 : index
    %c0_7 = arith.constant 0 : index
    %6 = vector.load %arg6[%c0_6, %c0_7] : memref<8x32xf32, #tpu.memory_space<vmem>>, vector<8x32xf32>
    %c0_8 = arith.constant 0 : index
    %c0_9 = arith.constant 0 : index
    %7 = vector.load %arg7[%c0_8, %c0_9] : memref<8x32xf32, #tpu.memory_space<vmem>>, vector<8x32xf32>
    %c0_10 = arith.constant 0 : index
    %c0_11 = arith.constant 0 : index
    %8 = vector.load %arg8[%c0_10, %c0_11] : memref<8x32xf32, #tpu.memory_space<vmem>>, vector<8x32xf32>
    %c0_12 = arith.constant 0 : index
    %c0_13 = arith.constant 0 : index
    %9 = vector.load %arg9[%c0_12, %c0_13] : memref<8x32xf32, #tpu.memory_space<vmem>>, vector<8x32xf32>
    %c0_i32_14 = arith.constant 0 : i32
    %10 = arith.index_cast %c0_i32_14 : i32 to index
    %c0_15 = arith.constant 0 : index
    %c0_16 = arith.constant 0 : index
    %11 = vector.load %arg1[%10, %c0_15, %c0_16] : memref<8x8x128xf32, #tpu.memory_space<vmem>>, vector<1x8x128xf32>
    %12 = vector.shape_cast %11 : vector<1x8x128xf32> to vector<8x128xf32>
    %13 = arith.truncf %6 : vector<8x32xf32> to vector<8x32xbf16>
    %cst = arith.constant dense<0.000000e+00> : vector<8x128xf32>
    %14 = tpu.matmul %13, %3, %cst {dimension_numbers = #tpu.dot_dimension_numbers<[1], [0], [0], [1], [0, 0, 1, 1], [], []>} : vector<8x32xbf16>, vector<32x128xbf16>, vector<8x128xf32> -> vector<8x128xf32>
    %15 = arith.addf %12, %14 : vector<8x128xf32>
    %16 = vector.extract_strided_slice %15 {offsets = [0, 0], sizes = [8, 96], strides = [1, 1]} : vector<8x128xf32> to vector<8x96xf32>
    %17 = arith.negf %16 : vector<8x96xf32>
    %18 = math.exp %17 : vector<8x96xf32>
    %cst_17 = arith.constant 1.000000e+00 : f32
    %19 = vector.broadcast %cst_17 : f32 to vector<8x96xf32>
    %20 = arith.addf %19, %18 : vector<8x96xf32>
    %21 = arith.divf %19, %20 : vector<8x96xf32>
    %22 = vector.extract_strided_slice %15 {offsets = [0, 96], sizes = [8, 32], strides = [1, 1]} : vector<8x128xf32> to vector<8x32xf32>
    %23 = math.tanh %22 : vector<8x32xf32>
    %24 = vector.extract_strided_slice %21 {offsets = [0, 0], sizes = [8, 32], strides = [1, 1]} : vector<8x96xf32> to vector<8x32xf32>
    %25 = vector.extract_strided_slice %21 {offsets = [0, 32], sizes = [8, 32], strides = [1, 1]} : vector<8x96xf32> to vector<8x32xf32>
    %26 = vector.extract_strided_slice %21 {offsets = [0, 64], sizes = [8, 32], strides = [1, 1]} : vector<8x96xf32> to vector<8x32xf32>
    %27 = arith.mulf %25, %7 : vector<8x32xf32>
    %28 = arith.mulf %24, %23 : vector<8x32xf32>
    %29 = arith.addf %27, %28 : vector<8x32xf32>
    %30 = math.tanh %29 : vector<8x32xf32>
    %31 = arith.mulf %26, %30 : vector<8x32xf32>
    %32 = tpu.concatenate %31, %8 in 1 : vector<8x32xf32>, vector<8x32xf32> -> vector<8x64xf32>
    %33 = arith.truncf %32 : vector<8x64xf32> to vector<8x64xbf16>
    %cst_18 = arith.constant dense<0.000000e+00> : vector<8x128xf32>
    %34 = tpu.matmul %33, %4, %cst_18 {dimension_numbers = #tpu.dot_dimension_numbers<[1], [0], [0], [1], [0, 0, 1, 1], [], []>} : vector<8x64xbf16>, vector<64x128xbf16>, vector<8x128xf32> -> vector<8x128xf32>
    %35 = vector.broadcast %5 : vector<1x128xf32> to vector<8x128xf32>
    %36 = arith.addf %34, %35 : vector<8x128xf32>
    %37 = vector.extract_strided_slice %36 {offsets = [0, 0], sizes = [8, 96], strides = [1, 1]} : vector<8x128xf32> to vector<8x96xf32>
    %38 = arith.negf %37 : vector<8x96xf32>
    %39 = math.exp %38 : vector<8x96xf32>
    %cst_19 = arith.constant 1.000000e+00 : f32
    %40 = vector.broadcast %cst_19 : f32 to vector<8x96xf32>
    %41 = arith.addf %40, %39 : vector<8x96xf32>
    %42 = arith.divf %40, %41 : vector<8x96xf32>
    %43 = vector.extract_strided_slice %36 {offsets = [0, 96], sizes = [8, 32], strides = [1, 1]} : vector<8x128xf32> to vector<8x32xf32>
    %44 = math.tanh %43 : vector<8x32xf32>
    %45 = vector.extract_strided_slice %42 {offsets = [0, 0], sizes = [8, 32], strides = [1, 1]} : vector<8x96xf32> to vector<8x32xf32>
    %46 = vector.extract_strided_slice %42 {offsets = [0, 32], sizes = [8, 32], strides = [1, 1]} : vector<8x96xf32> to vector<8x32xf32>
    %47 = vector.extract_strided_slice %42 {offsets = [0, 64], sizes = [8, 32], strides = [1, 1]} : vector<8x96xf32> to vector<8x32xf32>
    %48 = arith.mulf %46, %9 : vector<8x32xf32>
    %49 = arith.mulf %45, %44 : vector<8x32xf32>
    %50 = arith.addf %48, %49 : vector<8x32xf32>
    %51 = math.tanh %50 : vector<8x32xf32>
    %52 = arith.mulf %47, %51 : vector<8x32xf32>
    %c1_i32 = arith.constant 1 : i32
    %53 = arith.index_cast %c1_i32 : i32 to index
    %c0_20 = arith.constant 0 : index
    %c0_21 = arith.constant 0 : index
    %54 = vector.load %arg1[%53, %c0_20, %c0_21] : memref<8x8x128xf32, #tpu.memory_space<vmem>>, vector<1x8x128xf32>
    %55 = vector.shape_cast %54 : vector<1x8x128xf32> to vector<8x128xf32>
    %56 = arith.truncf %31 : vector<8x32xf32> to vector<8x32xbf16>
    %cst_22 = arith.constant dense<0.000000e+00> : vector<8x128xf32>
    %57 = tpu.matmul %56, %3, %cst_22 {dimension_numbers = #tpu.dot_dimension_numbers<[1], [0], [0], [1], [0, 0, 1, 1], [], []>} : vector<8x32xbf16>, vector<32x128xbf16>, vector<8x128xf32> -> vector<8x128xf32>
    %58 = arith.addf %55, %57 : vector<8x128xf32>
    %59 = vector.extract_strided_slice %58 {offsets = [0, 0], sizes = [8, 96], strides = [1, 1]} : vector<8x128xf32> to vector<8x96xf32>
    %60 = arith.negf %59 : vector<8x96xf32>
    %61 = math.exp %60 : vector<8x96xf32>
    %cst_23 = arith.constant 1.000000e+00 : f32
    %62 = vector.broadcast %cst_23 : f32 to vector<8x96xf32>
    %63 = arith.addf %62, %61 : vector<8x96xf32>
    %64 = arith.divf %62, %63 : vector<8x96xf32>
    %65 = vector.extract_strided_slice %58 {offsets = [0, 96], sizes = [8, 32], strides = [1, 1]} : vector<8x128xf32> to vector<8x32xf32>
    %66 = math.tanh %65 : vector<8x32xf32>
    %67 = vector.extract_strided_slice %64 {offsets = [0, 0], sizes = [8, 32], strides = [1, 1]} : vector<8x96xf32> to vector<8x32xf32>
    %68 = vector.extract_strided_slice %64 {offsets = [0, 32], sizes = [8, 32], strides = [1, 1]} : vector<8x96xf32> to vector<8x32xf32>
    %69 = vector.extract_strided_slice %64 {offsets = [0, 64], sizes = [8, 32], strides = [1, 1]} : vector<8x96xf32> to vector<8x32xf32>
    %70 = arith.mulf %68, %29 : vector<8x32xf32>
    %71 = arith.mulf %67, %66 : vector<8x32xf32>
    %72 = arith.addf %70, %71 : vector<8x32xf32>
    %73 = math.tanh %72 : vector<8x32xf32>
    %74 = arith.mulf %69, %73 : vector<8x32xf32>
    %75 = tpu.concatenate %74, %52 in 1 : vector<8x32xf32>, vector<8x32xf32> -> vector<8x64xf32>
    %76 = arith.truncf %75 : vector<8x64xf32> to vector<8x64xbf16>
    %cst_24 = arith.constant dense<0.000000e+00> : vector<8x128xf32>
    %77 = tpu.matmul %76, %4, %cst_24 {dimension_numbers = #tpu.dot_dimension_numbers<[1], [0], [0], [1], [0, 0, 1, 1], [], []>} : vector<8x64xbf16>, vector<64x128xbf16>, vector<8x128xf32> -> vector<8x128xf32>
    %78 = vector.broadcast %5 : vector<1x128xf32> to vector<8x128xf32>
    %79 = arith.addf %77, %78 : vector<8x128xf32>
    %80 = vector.extract_strided_slice %79 {offsets = [0, 0], sizes = [8, 96], strides = [1, 1]} : vector<8x128xf32> to vector<8x96xf32>
    %81 = arith.negf %80 : vector<8x96xf32>
    %82 = math.exp %81 : vector<8x96xf32>
    %cst_25 = arith.constant 1.000000e+00 : f32
    %83 = vector.broadcast %cst_25 : f32 to vector<8x96xf32>
    %84 = arith.addf %83, %82 : vector<8x96xf32>
    %85 = arith.divf %83, %84 : vector<8x96xf32>
    %86 = vector.extract_strided_slice %79 {offsets = [0, 96], sizes = [8, 32], strides = [1, 1]} : vector<8x128xf32> to vector<8x32xf32>
    %87 = math.tanh %86 : vector<8x32xf32>
    %88 = vector.extract_strided_slice %85 {offsets = [0, 0], sizes = [8, 32], strides = [1, 1]} : vector<8x96xf32> to vector<8x32xf32>
    %89 = vector.extract_strided_slice %85 {offsets = [0, 32], sizes = [8, 32], strides = [1, 1]} : vector<8x96xf32> to vector<8x32xf32>
    %90 = vector.extract_strided_slice %85 {offsets = [0, 64], sizes = [8, 32], strides = [1, 1]} : vector<8x96xf32> to vector<8x32xf32>
    %91 = arith.mulf %89, %50 : vector<8x32xf32>
    %92 = arith.mulf %88, %87 : vector<8x32xf32>
    %93 = arith.addf %91, %92 : vector<8x32xf32>
    %94 = math.tanh %93 : vector<8x32xf32>
    %95 = arith.mulf %90, %94 : vector<8x32xf32>
    %c2_i32 = arith.constant 2 : i32
    %96 = arith.index_cast %c2_i32 : i32 to index
    %c0_26 = arith.constant 0 : index
    %c0_27 = arith.constant 0 : index
    %97 = vector.load %arg1[%96, %c0_26, %c0_27] : memref<8x8x128xf32, #tpu.memory_space<vmem>>, vector<1x8x128xf32>
    %98 = vector.shape_cast %97 : vector<1x8x128xf32> to vector<8x128xf32>
    %99 = arith.truncf %74 : vector<8x32xf32> to vector<8x32xbf16>
    %cst_28 = arith.constant dense<0.000000e+00> : vector<8x128xf32>
    %100 = tpu.matmul %99, %3, %cst_28 {dimension_numbers = #tpu.dot_dimension_numbers<[1], [0], [0], [1], [0, 0, 1, 1], [], []>} : vector<8x32xbf16>, vector<32x128xbf16>, vector<8x128xf32> -> vector<8x128xf32>
    %101 = arith.addf %98, %100 : vector<8x128xf32>
    %102 = vector.extract_strided_slice %101 {offsets = [0, 0], sizes = [8, 96], strides = [1, 1]} : vector<8x128xf32> to vector<8x96xf32>
    %103 = arith.negf %102 : vector<8x96xf32>
    %104 = math.exp %103 : vector<8x96xf32>
    %cst_29 = arith.constant 1.000000e+00 : f32
    %105 = vector.broadcast %cst_29 : f32 to vector<8x96xf32>
    %106 = arith.addf %105, %104 : vector<8x96xf32>
    %107 = arith.divf %105, %106 : vector<8x96xf32>
    %108 = vector.extract_strided_slice %101 {offsets = [0, 96], sizes = [8, 32], strides = [1, 1]} : vector<8x128xf32> to vector<8x32xf32>
    %109 = math.tanh %108 : vector<8x32xf32>
    %110 = vector.extract_strided_slice %107 {offsets = [0, 0], sizes = [8, 32], strides = [1, 1]} : vector<8x96xf32> to vector<8x32xf32>
    %111 = vector.extract_strided_slice %107 {offsets = [0, 32], sizes = [8, 32], strides = [1, 1]} : vector<8x96xf32> to vector<8x32xf32>
    %112 = vector.extract_strided_slice %107 {offsets = [0, 64], sizes = [8, 32], strides = [1, 1]} : vector<8x96xf32> to vector<8x32xf32>
    %113 = arith.mulf %111, %72 : vector<8x32xf32>
    %114 = arith.mulf %110, %109 : vector<8x32xf32>
    %115 = arith.addf %113, %114 : vector<8x32xf32>
    %116 = math.tanh %115 : vector<8x32xf32>
    %117 = arith.mulf %112, %116 : vector<8x32xf32>
    %118 = tpu.concatenate %117, %95 in 1 : vector<8x32xf32>, vector<8x32xf32> -> vector<8x64xf32>
    %119 = arith.truncf %118 : vector<8x64xf32> to vector<8x64xbf16>
    %cst_30 = arith.constant dense<0.000000e+00> : vector<8x128xf32>
    %120 = tpu.matmul %119, %4, %cst_30 {dimension_numbers = #tpu.dot_dimension_numbers<[1], [0], [0], [1], [0, 0, 1, 1], [], []>} : vector<8x64xbf16>, vector<64x128xbf16>, vector<8x128xf32> -> vector<8x128xf32>
    %121 = vector.broadcast %5 : vector<1x128xf32> to vector<8x128xf32>
    %122 = arith.addf %120, %121 : vector<8x128xf32>
    %123 = vector.extract_strided_slice %122 {offsets = [0, 0], sizes = [8, 96], strides = [1, 1]} : vector<8x128xf32> to vector<8x96xf32>
    %124 = arith.negf %123 : vector<8x96xf32>
    %125 = math.exp %124 : vector<8x96xf32>
    %cst_31 = arith.constant 1.000000e+00 : f32
    %126 = vector.broadcast %cst_31 : f32 to vector<8x96xf32>
    %127 = arith.addf %126, %125 : vector<8x96xf32>
    %128 = arith.divf %126, %127 : vector<8x96xf32>
    %129 = vector.extract_strided_slice %122 {offsets = [0, 96], sizes = [8, 32], strides = [1, 1]} : vector<8x128xf32> to vector<8x32xf32>
    %130 = math.tanh %129 : vector<8x32xf32>
    %131 = vector.extract_strided_slice %128 {offsets = [0, 0], sizes = [8, 32], strides = [1, 1]} : vector<8x96xf32> to vector<8x32xf32>
    %132 = vector.extract_strided_slice %128 {offsets = [0, 32], sizes = [8, 32], strides = [1, 1]} : vector<8x96xf32> to vector<8x32xf32>
    %133 = vector.extract_strided_slice %128 {offsets = [0, 64], sizes = [8, 32], strides = [1, 1]} : vector<8x96xf32> to vector<8x32xf32>
    %134 = arith.mulf %132, %93 : vector<8x32xf32>
    %135 = arith.mulf %131, %130 : vector<8x32xf32>
    %136 = arith.addf %134, %135 : vector<8x32xf32>
    %137 = math.tanh %136 : vector<8x32xf32>
    %138 = arith.mulf %133, %137 : vector<8x32xf32>
    %c3_i32 = arith.constant 3 : i32
    %139 = arith.index_cast %c3_i32 : i32 to index
    %c0_32 = arith.constant 0 : index
    %c0_33 = arith.constant 0 : index
    %140 = vector.load %arg1[%139, %c0_32, %c0_33] : memref<8x8x128xf32, #tpu.memory_space<vmem>>, vector<1x8x128xf32>
    %141 = vector.shape_cast %140 : vector<1x8x128xf32> to vector<8x128xf32>
    %142 = arith.truncf %117 : vector<8x32xf32> to vector<8x32xbf16>
    %cst_34 = arith.constant dense<0.000000e+00> : vector<8x128xf32>
    %143 = tpu.matmul %142, %3, %cst_34 {dimension_numbers = #tpu.dot_dimension_numbers<[1], [0], [0], [1], [0, 0, 1, 1], [], []>} : vector<8x32xbf16>, vector<32x128xbf16>, vector<8x128xf32> -> vector<8x128xf32>
    %144 = arith.addf %141, %143 : vector<8x128xf32>
    %145 = vector.extract_strided_slice %144 {offsets = [0, 0], sizes = [8, 96], strides = [1, 1]} : vector<8x128xf32> to vector<8x96xf32>
    %146 = arith.negf %145 : vector<8x96xf32>
    %147 = math.exp %146 : vector<8x96xf32>
    %cst_35 = arith.constant 1.000000e+00 : f32
    %148 = vector.broadcast %cst_35 : f32 to vector<8x96xf32>
    %149 = arith.addf %148, %147 : vector<8x96xf32>
    %150 = arith.divf %148, %149 : vector<8x96xf32>
    %151 = vector.extract_strided_slice %144 {offsets = [0, 96], sizes = [8, 32], strides = [1, 1]} : vector<8x128xf32> to vector<8x32xf32>
    %152 = math.tanh %151 : vector<8x32xf32>
    %153 = vector.extract_strided_slice %150 {offsets = [0, 0], sizes = [8, 32], strides = [1, 1]} : vector<8x96xf32> to vector<8x32xf32>
    %154 = vector.extract_strided_slice %150 {offsets = [0, 32], sizes = [8, 32], strides = [1, 1]} : vector<8x96xf32> to vector<8x32xf32>
    %155 = vector.extract_strided_slice %150 {offsets = [0, 64], sizes = [8, 32], strides = [1, 1]} : vector<8x96xf32> to vector<8x32xf32>
    %156 = arith.mulf %154, %115 : vector<8x32xf32>
    %157 = arith.mulf %153, %152 : vector<8x32xf32>
    %158 = arith.addf %156, %157 : vector<8x32xf32>
    %159 = math.tanh %158 : vector<8x32xf32>
    %160 = arith.mulf %155, %159 : vector<8x32xf32>
    %161 = tpu.concatenate %160, %138 in 1 : vector<8x32xf32>, vector<8x32xf32> -> vector<8x64xf32>
    %162 = arith.truncf %161 : vector<8x64xf32> to vector<8x64xbf16>
    %cst_36 = arith.constant dense<0.000000e+00> : vector<8x128xf32>
    %163 = tpu.matmul %162, %4, %cst_36 {dimension_numbers = #tpu.dot_dimension_numbers<[1], [0], [0], [1], [0, 0, 1, 1], [], []>} : vector<8x64xbf16>, vector<64x128xbf16>, vector<8x128xf32> -> vector<8x128xf32>
    %164 = vector.broadcast %5 : vector<1x128xf32> to vector<8x128xf32>
    %165 = arith.addf %163, %164 : vector<8x128xf32>
    %166 = vector.extract_strided_slice %165 {offsets = [0, 0], sizes = [8, 96], strides = [1, 1]} : vector<8x128xf32> to vector<8x96xf32>
    %167 = arith.negf %166 : vector<8x96xf32>
    %168 = math.exp %167 : vector<8x96xf32>
    %cst_37 = arith.constant 1.000000e+00 : f32
    %169 = vector.broadcast %cst_37 : f32 to vector<8x96xf32>
    %170 = arith.addf %169, %168 : vector<8x96xf32>
    %171 = arith.divf %169, %170 : vector<8x96xf32>
    %172 = vector.extract_strided_slice %165 {offsets = [0, 96], sizes = [8, 32], strides = [1, 1]} : vector<8x128xf32> to vector<8x32xf32>
    %173 = math.tanh %172 : vector<8x32xf32>
    %174 = vector.extract_strided_slice %171 {offsets = [0, 0], sizes = [8, 32], strides = [1, 1]} : vector<8x96xf32> to vector<8x32xf32>
    %175 = vector.extract_strided_slice %171 {offsets = [0, 32], sizes = [8, 32], strides = [1, 1]} : vector<8x96xf32> to vector<8x32xf32>
    %176 = vector.extract_strided_slice %171 {offsets = [0, 64], sizes = [8, 32], strides = [1, 1]} : vector<8x96xf32> to vector<8x32xf32>
    %177 = arith.mulf %175, %136 : vector<8x32xf32>
    %178 = arith.mulf %174, %173 : vector<8x32xf32>
    %179 = arith.addf %177, %178 : vector<8x32xf32>
    %180 = math.tanh %179 : vector<8x32xf32>
    %181 = arith.mulf %176, %180 : vector<8x32xf32>
    %c4_i32 = arith.constant 4 : i32
    %182 = arith.index_cast %c4_i32 : i32 to index
    %c0_38 = arith.constant 0 : index
    %c0_39 = arith.constant 0 : index
    %183 = vector.load %arg1[%182, %c0_38, %c0_39] : memref<8x8x128xf32, #tpu.memory_space<vmem>>, vector<1x8x128xf32>
    %184 = vector.shape_cast %183 : vector<1x8x128xf32> to vector<8x128xf32>
    %185 = arith.truncf %160 : vector<8x32xf32> to vector<8x32xbf16>
    %cst_40 = arith.constant dense<0.000000e+00> : vector<8x128xf32>
    %186 = tpu.matmul %185, %3, %cst_40 {dimension_numbers = #tpu.dot_dimension_numbers<[1], [0], [0], [1], [0, 0, 1, 1], [], []>} : vector<8x32xbf16>, vector<32x128xbf16>, vector<8x128xf32> -> vector<8x128xf32>
    %187 = arith.addf %184, %186 : vector<8x128xf32>
    %188 = vector.extract_strided_slice %187 {offsets = [0, 0], sizes = [8, 96], strides = [1, 1]} : vector<8x128xf32> to vector<8x96xf32>
    %189 = arith.negf %188 : vector<8x96xf32>
    %190 = math.exp %189 : vector<8x96xf32>
    %cst_41 = arith.constant 1.000000e+00 : f32
    %191 = vector.broadcast %cst_41 : f32 to vector<8x96xf32>
    %192 = arith.addf %191, %190 : vector<8x96xf32>
    %193 = arith.divf %191, %192 : vector<8x96xf32>
    %194 = vector.extract_strided_slice %187 {offsets = [0, 96], sizes = [8, 32], strides = [1, 1]} : vector<8x128xf32> to vector<8x32xf32>
    %195 = math.tanh %194 : vector<8x32xf32>
    %196 = vector.extract_strided_slice %193 {offsets = [0, 0], sizes = [8, 32], strides = [1, 1]} : vector<8x96xf32> to vector<8x32xf32>
    %197 = vector.extract_strided_slice %193 {offsets = [0, 32], sizes = [8, 32], strides = [1, 1]} : vector<8x96xf32> to vector<8x32xf32>
    %198 = vector.extract_strided_slice %193 {offsets = [0, 64], sizes = [8, 32], strides = [1, 1]} : vector<8x96xf32> to vector<8x32xf32>
    %199 = arith.mulf %197, %158 : vector<8x32xf32>
    %200 = arith.mulf %196, %195 : vector<8x32xf32>
    %201 = arith.addf %199, %200 : vector<8x32xf32>
    %202 = math.tanh %201 : vector<8x32xf32>
    %203 = arith.mulf %198, %202 : vector<8x32xf32>
    %204 = tpu.concatenate %203, %181 in 1 : vector<8x32xf32>, vector<8x32xf32> -> vector<8x64xf32>
    %205 = arith.truncf %204 : vector<8x64xf32> to vector<8x64xbf16>
    %cst_42 = arith.constant dense<0.000000e+00> : vector<8x128xf32>
    %206 = tpu.matmul %205, %4, %cst_42 {dimension_numbers = #tpu.dot_dimension_numbers<[1], [0], [0], [1], [0, 0, 1, 1], [], []>} : vector<8x64xbf16>, vector<64x128xbf16>, vector<8x128xf32> -> vector<8x128xf32>
    %207 = vector.broadcast %5 : vector<1x128xf32> to vector<8x128xf32>
    %208 = arith.addf %206, %207 : vector<8x128xf32>
    %209 = vector.extract_strided_slice %208 {offsets = [0, 0], sizes = [8, 96], strides = [1, 1]} : vector<8x128xf32> to vector<8x96xf32>
    %210 = arith.negf %209 : vector<8x96xf32>
    %211 = math.exp %210 : vector<8x96xf32>
    %cst_43 = arith.constant 1.000000e+00 : f32
    %212 = vector.broadcast %cst_43 : f32 to vector<8x96xf32>
    %213 = arith.addf %212, %211 : vector<8x96xf32>
    %214 = arith.divf %212, %213 : vector<8x96xf32>
    %215 = vector.extract_strided_slice %208 {offsets = [0, 96], sizes = [8, 32], strides = [1, 1]} : vector<8x128xf32> to vector<8x32xf32>
    %216 = math.tanh %215 : vector<8x32xf32>
    %217 = vector.extract_strided_slice %214 {offsets = [0, 0], sizes = [8, 32], strides = [1, 1]} : vector<8x96xf32> to vector<8x32xf32>
    %218 = vector.extract_strided_slice %214 {offsets = [0, 32], sizes = [8, 32], strides = [1, 1]} : vector<8x96xf32> to vector<8x32xf32>
    %219 = vector.extract_strided_slice %214 {offsets = [0, 64], sizes = [8, 32], strides = [1, 1]} : vector<8x96xf32> to vector<8x32xf32>
    %220 = arith.mulf %218, %179 : vector<8x32xf32>
    %221 = arith.mulf %217, %216 : vector<8x32xf32>
    %222 = arith.addf %220, %221 : vector<8x32xf32>
    %223 = math.tanh %222 : vector<8x32xf32>
    %224 = arith.mulf %219, %223 : vector<8x32xf32>
    %c5_i32 = arith.constant 5 : i32
    %225 = arith.index_cast %c5_i32 : i32 to index
    %c0_44 = arith.constant 0 : index
    %c0_45 = arith.constant 0 : index
    %226 = vector.load %arg1[%225, %c0_44, %c0_45] : memref<8x8x128xf32, #tpu.memory_space<vmem>>, vector<1x8x128xf32>
    %227 = vector.shape_cast %226 : vector<1x8x128xf32> to vector<8x128xf32>
    %228 = arith.truncf %203 : vector<8x32xf32> to vector<8x32xbf16>
    %cst_46 = arith.constant dense<0.000000e+00> : vector<8x128xf32>
    %229 = tpu.matmul %228, %3, %cst_46 {dimension_numbers = #tpu.dot_dimension_numbers<[1], [0], [0], [1], [0, 0, 1, 1], [], []>} : vector<8x32xbf16>, vector<32x128xbf16>, vector<8x128xf32> -> vector<8x128xf32>
    %230 = arith.addf %227, %229 : vector<8x128xf32>
    %231 = vector.extract_strided_slice %230 {offsets = [0, 0], sizes = [8, 96], strides = [1, 1]} : vector<8x128xf32> to vector<8x96xf32>
    %232 = arith.negf %231 : vector<8x96xf32>
    %233 = math.exp %232 : vector<8x96xf32>
    %cst_47 = arith.constant 1.000000e+00 : f32
    %234 = vector.broadcast %cst_47 : f32 to vector<8x96xf32>
    %235 = arith.addf %234, %233 : vector<8x96xf32>
    %236 = arith.divf %234, %235 : vector<8x96xf32>
    %237 = vector.extract_strided_slice %230 {offsets = [0, 96], sizes = [8, 32], strides = [1, 1]} : vector<8x128xf32> to vector<8x32xf32>
    %238 = math.tanh %237 : vector<8x32xf32>
    %239 = vector.extract_strided_slice %236 {offsets = [0, 0], sizes = [8, 32], strides = [1, 1]} : vector<8x96xf32> to vector<8x32xf32>
    %240 = vector.extract_strided_slice %236 {offsets = [0, 32], sizes = [8, 32], strides = [1, 1]} : vector<8x96xf32> to vector<8x32xf32>
    %241 = vector.extract_strided_slice %236 {offsets = [0, 64], sizes = [8, 32], strides = [1, 1]} : vector<8x96xf32> to vector<8x32xf32>
    %242 = arith.mulf %240, %201 : vector<8x32xf32>
    %243 = arith.mulf %239, %238 : vector<8x32xf32>
    %244 = arith.addf %242, %243 : vector<8x32xf32>
    %245 = math.tanh %244 : vector<8x32xf32>
    %246 = arith.mulf %241, %245 : vector<8x32xf32>
    %247 = tpu.concatenate %246, %224 in 1 : vector<8x32xf32>, vector<8x32xf32> -> vector<8x64xf32>
    %248 = arith.truncf %247 : vector<8x64xf32> to vector<8x64xbf16>
    %cst_48 = arith.constant dense<0.000000e+00> : vector<8x128xf32>
    %249 = tpu.matmul %248, %4, %cst_48 {dimension_numbers = #tpu.dot_dimension_numbers<[1], [0], [0], [1], [0, 0, 1, 1], [], []>} : vector<8x64xbf16>, vector<64x128xbf16>, vector<8x128xf32> -> vector<8x128xf32>
    %250 = vector.broadcast %5 : vector<1x128xf32> to vector<8x128xf32>
    %251 = arith.addf %249, %250 : vector<8x128xf32>
    %252 = vector.extract_strided_slice %251 {offsets = [0, 0], sizes = [8, 96], strides = [1, 1]} : vector<8x128xf32> to vector<8x96xf32>
    %253 = arith.negf %252 : vector<8x96xf32>
    %254 = math.exp %253 : vector<8x96xf32>
    %cst_49 = arith.constant 1.000000e+00 : f32
    %255 = vector.broadcast %cst_49 : f32 to vector<8x96xf32>
    %256 = arith.addf %255, %254 : vector<8x96xf32>
    %257 = arith.divf %255, %256 : vector<8x96xf32>
    %258 = vector.extract_strided_slice %251 {offsets = [0, 96], sizes = [8, 32], strides = [1, 1]} : vector<8x128xf32> to vector<8x32xf32>
    %259 = math.tanh %258 : vector<8x32xf32>
    %260 = vector.extract_strided_slice %257 {offsets = [0, 0], sizes = [8, 32], strides = [1, 1]} : vector<8x96xf32> to vector<8x32xf32>
    %261 = vector.extract_strided_slice %257 {offsets = [0, 32], sizes = [8, 32], strides = [1, 1]} : vector<8x96xf32> to vector<8x32xf32>
    %262 = vector.extract_strided_slice %257 {offsets = [0, 64], sizes = [8, 32], strides = [1, 1]} : vector<8x96xf32> to vector<8x32xf32>
    %263 = arith.mulf %261, %222 : vector<8x32xf32>
    %264 = arith.mulf %260, %259 : vector<8x32xf32>
    %265 = arith.addf %263, %264 : vector<8x32xf32>
    %266 = math.tanh %265 : vector<8x32xf32>
    %267 = arith.mulf %262, %266 : vector<8x32xf32>
    %c6_i32 = arith.constant 6 : i32
    %268 = arith.index_cast %c6_i32 : i32 to index
    %c0_50 = arith.constant 0 : index
    %c0_51 = arith.constant 0 : index
    %269 = vector.load %arg1[%268, %c0_50, %c0_51] : memref<8x8x128xf32, #tpu.memory_space<vmem>>, vector<1x8x128xf32>
    %270 = vector.shape_cast %269 : vector<1x8x128xf32> to vector<8x128xf32>
    %271 = arith.truncf %246 : vector<8x32xf32> to vector<8x32xbf16>
    %cst_52 = arith.constant dense<0.000000e+00> : vector<8x128xf32>
    %272 = tpu.matmul %271, %3, %cst_52 {dimension_numbers = #tpu.dot_dimension_numbers<[1], [0], [0], [1], [0, 0, 1, 1], [], []>} : vector<8x32xbf16>, vector<32x128xbf16>, vector<8x128xf32> -> vector<8x128xf32>
    %273 = arith.addf %270, %272 : vector<8x128xf32>
    %274 = vector.extract_strided_slice %273 {offsets = [0, 0], sizes = [8, 96], strides = [1, 1]} : vector<8x128xf32> to vector<8x96xf32>
    %275 = arith.negf %274 : vector<8x96xf32>
    %276 = math.exp %275 : vector<8x96xf32>
    %cst_53 = arith.constant 1.000000e+00 : f32
    %277 = vector.broadcast %cst_53 : f32 to vector<8x96xf32>
    %278 = arith.addf %277, %276 : vector<8x96xf32>
    %279 = arith.divf %277, %278 : vector<8x96xf32>
    %280 = vector.extract_strided_slice %273 {offsets = [0, 96], sizes = [8, 32], strides = [1, 1]} : vector<8x128xf32> to vector<8x32xf32>
    %281 = math.tanh %280 : vector<8x32xf32>
    %282 = vector.extract_strided_slice %279 {offsets = [0, 0], sizes = [8, 32], strides = [1, 1]} : vector<8x96xf32> to vector<8x32xf32>
    %283 = vector.extract_strided_slice %279 {offsets = [0, 32], sizes = [8, 32], strides = [1, 1]} : vector<8x96xf32> to vector<8x32xf32>
    %284 = vector.extract_strided_slice %279 {offsets = [0, 64], sizes = [8, 32], strides = [1, 1]} : vector<8x96xf32> to vector<8x32xf32>
    %285 = arith.mulf %283, %244 : vector<8x32xf32>
    %286 = arith.mulf %282, %281 : vector<8x32xf32>
    %287 = arith.addf %285, %286 : vector<8x32xf32>
    %288 = math.tanh %287 : vector<8x32xf32>
    %289 = arith.mulf %284, %288 : vector<8x32xf32>
    %290 = tpu.concatenate %289, %267 in 1 : vector<8x32xf32>, vector<8x32xf32> -> vector<8x64xf32>
    %291 = arith.truncf %290 : vector<8x64xf32> to vector<8x64xbf16>
    %cst_54 = arith.constant dense<0.000000e+00> : vector<8x128xf32>
    %292 = tpu.matmul %291, %4, %cst_54 {dimension_numbers = #tpu.dot_dimension_numbers<[1], [0], [0], [1], [0, 0, 1, 1], [], []>} : vector<8x64xbf16>, vector<64x128xbf16>, vector<8x128xf32> -> vector<8x128xf32>
    %293 = vector.broadcast %5 : vector<1x128xf32> to vector<8x128xf32>
    %294 = arith.addf %292, %293 : vector<8x128xf32>
    %295 = vector.extract_strided_slice %294 {offsets = [0, 0], sizes = [8, 96], strides = [1, 1]} : vector<8x128xf32> to vector<8x96xf32>
    %296 = arith.negf %295 : vector<8x96xf32>
    %297 = math.exp %296 : vector<8x96xf32>
    %cst_55 = arith.constant 1.000000e+00 : f32
    %298 = vector.broadcast %cst_55 : f32 to vector<8x96xf32>
    %299 = arith.addf %298, %297 : vector<8x96xf32>
    %300 = arith.divf %298, %299 : vector<8x96xf32>
    %301 = vector.extract_strided_slice %294 {offsets = [0, 96], sizes = [8, 32], strides = [1, 1]} : vector<8x128xf32> to vector<8x32xf32>
    %302 = math.tanh %301 : vector<8x32xf32>
    %303 = vector.extract_strided_slice %300 {offsets = [0, 0], sizes = [8, 32], strides = [1, 1]} : vector<8x96xf32> to vector<8x32xf32>
    %304 = vector.extract_strided_slice %300 {offsets = [0, 32], sizes = [8, 32], strides = [1, 1]} : vector<8x96xf32> to vector<8x32xf32>
    %305 = vector.extract_strided_slice %300 {offsets = [0, 64], sizes = [8, 32], strides = [1, 1]} : vector<8x96xf32> to vector<8x32xf32>
    %306 = arith.mulf %304, %265 : vector<8x32xf32>
    %307 = arith.mulf %303, %302 : vector<8x32xf32>
    %308 = arith.addf %306, %307 : vector<8x32xf32>
    %309 = math.tanh %308 : vector<8x32xf32>
    %310 = arith.mulf %305, %309 : vector<8x32xf32>
    %c7_i32 = arith.constant 7 : i32
    %311 = arith.index_cast %c7_i32 : i32 to index
    %c0_56 = arith.constant 0 : index
    %c0_57 = arith.constant 0 : index
    %312 = vector.load %arg1[%311, %c0_56, %c0_57] : memref<8x8x128xf32, #tpu.memory_space<vmem>>, vector<1x8x128xf32>
    %313 = vector.shape_cast %312 : vector<1x8x128xf32> to vector<8x128xf32>
    %314 = arith.truncf %289 : vector<8x32xf32> to vector<8x32xbf16>
    %cst_58 = arith.constant dense<0.000000e+00> : vector<8x128xf32>
    %315 = tpu.matmul %314, %3, %cst_58 {dimension_numbers = #tpu.dot_dimension_numbers<[1], [0], [0], [1], [0, 0, 1, 1], [], []>} : vector<8x32xbf16>, vector<32x128xbf16>, vector<8x128xf32> -> vector<8x128xf32>
    %316 = arith.addf %313, %315 : vector<8x128xf32>
    %317 = vector.extract_strided_slice %316 {offsets = [0, 0], sizes = [8, 96], strides = [1, 1]} : vector<8x128xf32> to vector<8x96xf32>
    %318 = arith.negf %317 : vector<8x96xf32>
    %319 = math.exp %318 : vector<8x96xf32>
    %cst_59 = arith.constant 1.000000e+00 : f32
    %320 = vector.broadcast %cst_59 : f32 to vector<8x96xf32>
    %321 = arith.addf %320, %319 : vector<8x96xf32>
    %322 = arith.divf %320, %321 : vector<8x96xf32>
    %323 = vector.extract_strided_slice %316 {offsets = [0, 96], sizes = [8, 32], strides = [1, 1]} : vector<8x128xf32> to vector<8x32xf32>
    %324 = math.tanh %323 : vector<8x32xf32>
    %325 = vector.extract_strided_slice %322 {offsets = [0, 0], sizes = [8, 32], strides = [1, 1]} : vector<8x96xf32> to vector<8x32xf32>
    %326 = vector.extract_strided_slice %322 {offsets = [0, 32], sizes = [8, 32], strides = [1, 1]} : vector<8x96xf32> to vector<8x32xf32>
    %327 = vector.extract_strided_slice %322 {offsets = [0, 64], sizes = [8, 32], strides = [1, 1]} : vector<8x96xf32> to vector<8x32xf32>
    %328 = arith.mulf %326, %287 : vector<8x32xf32>
    %329 = arith.mulf %325, %324 : vector<8x32xf32>
    %330 = arith.addf %328, %329 : vector<8x32xf32>
    %331 = math.tanh %330 : vector<8x32xf32>
    %332 = arith.mulf %327, %331 : vector<8x32xf32>
    %333 = tpu.concatenate %332, %310 in 1 : vector<8x32xf32>, vector<8x32xf32> -> vector<8x64xf32>
    %334 = arith.truncf %333 : vector<8x64xf32> to vector<8x64xbf16>
    %cst_60 = arith.constant dense<0.000000e+00> : vector<8x128xf32>
    %335 = tpu.matmul %334, %4, %cst_60 {dimension_numbers = #tpu.dot_dimension_numbers<[1], [0], [0], [1], [0, 0, 1, 1], [], []>} : vector<8x64xbf16>, vector<64x128xbf16>, vector<8x128xf32> -> vector<8x128xf32>
    %336 = vector.broadcast %5 : vector<1x128xf32> to vector<8x128xf32>
    %337 = arith.addf %335, %336 : vector<8x128xf32>
    %338 = vector.extract_strided_slice %337 {offsets = [0, 0], sizes = [8, 96], strides = [1, 1]} : vector<8x128xf32> to vector<8x96xf32>
    %339 = arith.negf %338 : vector<8x96xf32>
    %340 = math.exp %339 : vector<8x96xf32>
    %cst_61 = arith.constant 1.000000e+00 : f32
    %341 = vector.broadcast %cst_61 : f32 to vector<8x96xf32>
    %342 = arith.addf %341, %340 : vector<8x96xf32>
    %343 = arith.divf %341, %342 : vector<8x96xf32>
    %344 = vector.extract_strided_slice %337 {offsets = [0, 96], sizes = [8, 32], strides = [1, 1]} : vector<8x128xf32> to vector<8x32xf32>
    %345 = math.tanh %344 : vector<8x32xf32>
    %346 = vector.extract_strided_slice %343 {offsets = [0, 0], sizes = [8, 32], strides = [1, 1]} : vector<8x96xf32> to vector<8x32xf32>
    %347 = vector.extract_strided_slice %343 {offsets = [0, 32], sizes = [8, 32], strides = [1, 1]} : vector<8x96xf32> to vector<8x32xf32>
    %348 = vector.extract_strided_slice %343 {offsets = [0, 64], sizes = [8, 32], strides = [1, 1]} : vector<8x96xf32> to vector<8x32xf32>
    %349 = arith.mulf %347, %308 : vector<8x32xf32>
    %350 = arith.mulf %346, %345 : vector<8x32xf32>
    %351 = arith.addf %349, %350 : vector<8x32xf32>
    %352 = math.tanh %351 : vector<8x32xf32>
    %353 = arith.mulf %348, %352 : vector<8x32xf32>
    %c8_i32 = arith.constant 8 : i32
    %c0_62 = arith.constant 0 : index
    %c0_63 = arith.constant 0 : index
    %354 = vector.load %arg6[%c0_62, %c0_63] : memref<8x32xf32, #tpu.memory_space<vmem>>, vector<8x32xf32>
    tpu.vector_store %arg6[%c0_62, %c0_63], %332 {strides = array<i32>} : memref<8x32xf32, #tpu.memory_space<vmem>>, vector<8x32xf32>,
    %c0_64 = arith.constant 0 : index
    %c0_65 = arith.constant 0 : index
    %355 = vector.load %arg7[%c0_64, %c0_65] : memref<8x32xf32, #tpu.memory_space<vmem>>, vector<8x32xf32>
    tpu.vector_store %arg7[%c0_64, %c0_65], %330 {strides = array<i32>} : memref<8x32xf32, #tpu.memory_space<vmem>>, vector<8x32xf32>,
    %c0_66 = arith.constant 0 : index
    %c0_67 = arith.constant 0 : index
    %356 = vector.load %arg8[%c0_66, %c0_67] : memref<8x32xf32, #tpu.memory_space<vmem>>, vector<8x32xf32>
    tpu.vector_store %arg8[%c0_66, %c0_67], %353 {strides = array<i32>} : memref<8x32xf32, #tpu.memory_space<vmem>>, vector<8x32xf32>,
    %c0_68 = arith.constant 0 : index
    %c0_69 = arith.constant 0 : index
    %357 = vector.load %arg9[%c0_68, %c0_69] : memref<8x32xf32, #tpu.memory_space<vmem>>, vector<8x32xf32>
    tpu.vector_store %arg9[%c0_68, %c0_69], %351 {strides = array<i32>} : memref<8x32xf32, #tpu.memory_space<vmem>>, vector<8x32xf32>,
    %c1_i32_70 = arith.constant 1 : i32
    %358 = arith.cmpi eq, %arg0, %c1_i32_70 : i32
    %359 = arith.extui %358 : i1 to i32
    %c0_i32_71 = arith.constant 0 : i32
    %360 = arith.cmpi ne, %359, %c0_i32_71 : i32
    scf.if %360 {
      %c0_72 = arith.constant 0 : index
      %c0_73 = arith.constant 0 : index
      %361 = vector.load %arg5[%c0_72, %c0_73] : memref<8x32xf32, #tpu.memory_space<vmem>>, vector<8x32xf32>
      tpu.vector_store %arg5[%c0_72, %c0_73], %353 {strides = array<i32>} : memref<8x32xf32, #tpu.memory_space<vmem>>, vector<8x32xf32>,
    } else {
    }
    return
  }
  func.func @transform_0(%arg0: i32) -> (i32, i32, i32) {
    %c0_i32 = arith.constant 0 : i32
    %c0_i32_0 = arith.constant 0 : i32
    %c0_i32_1 = arith.constant 0 : i32
    return %arg0, %c0_i32, %c0_i32_0 : i32, i32, i32
  }
  func.func @transform_1(%arg0: i32) -> (i32, i32) {
    %c0_i32 = arith.constant 0 : i32
    %c0_i32_0 = arith.constant 0 : i32
    %c0_i32_1 = arith.constant 0 : i32
    return %c0_i32, %c0_i32_0 : i32, i32
  }
  func.func @transform_2(%arg0: i32) -> (i32, i32) {
    %c0_i32 = arith.constant 0 : i32
    %c0_i32_0 = arith.constant 0 : i32
    %c0_i32_1 = arith.constant 0 : i32
    return %c0_i32, %c0_i32_0 : i32, i32
  }
  func.func @transform_3(%arg0: i32) -> (i32, i32) {
    %c0_i32 = arith.constant 0 : i32
    %c0_i32_0 = arith.constant 0 : i32
    %c0_i32_1 = arith.constant 0 : i32
    return %c0_i32, %c0_i32_0 : i32, i32
  }
  func.func @transform_4(%arg0: i32) -> (i32, i32) {
    %c0_i32 = arith.constant 0 : i32
    %c0_i32_0 = arith.constant 0 : i32
    %c0_i32_1 = arith.constant 0 : i32
    return %c0_i32, %c0_i32_0 : i32, i32
  }
}

</mosaic_0001>

<bundles_post_ra>
// kernel: tpu_custom_call.1
= control target key start
LH: loop header
LB: loop body
LE: loop exit
PB: predicated region body
PF: predicated region fallthrough
CT: control target
= control target key end

     0   :  { %9 = vsyncpa [#allocation7], 0  ;;  %s2772_s0 = inlined_call_operand.hbm [shape: f32[16,8,128], index: 0, kind: input, shape index: {}]   ;;  %s2773_s1 = inlined_call_operand.hbm [shape: bf16[32,128], index: 1, kind: input, shape index: {}]   ;;  %s2774_s2 = inlined_call_operand.hbm [shape: bf16[64,128], index: 2, kind: input, shape index: {}]   ;;  %s2775_s3 = inlined_call_operand.vmem [shape: f32[1,128], index: 3, kind: input, shape index: {}]   ;;  %s2776_s4 = inlined_call_operand.hbm [shape: f32[8,32], index: 4, kind: output, shape index: {}]  }
   0x1   :  { %11 = vsyncpa [#allocation7 + $0x1], 0 }
   0x2   :  { %12 = vsyncpa [#allocation10], 0 }
   0x3   :  { %13 = vsyncpa [#allocation8], 0  ;;  %s2302_s15 = smov 0   ;;  %s2304_s16 = smov 0  }
   0x4   :  { %s2306_s17 = smov 0   ;;  %s2308_s18 = smov 0  }
   0x5 LB: > { %s2321_s19 = sadd.s32 4294967295, %s2261_s18   ;;  %p39_p0 = scmp.ne.s32.totalorder %s2253_s16, %s2249_s15  ;;  %s2261_s18 = sphi %s2308_s18, %s2792_s18   ;;  %s2257_s17 = sphi %s2306_s17, %s2791_s17   ;;  %s2253_s16 = sphi %s2304_s16, %s2790_s16   ;;  %s2249_s15 = sphi %s2302_s15, %s2789_s15  }
   0x6   : > { %p2777_p1 = scmp.eq.s32.totalorder %s2321_s19, 0  ;;  %p1615_p2 = scmp.ge.s32.totalorder %s2261_s18, 1 }
   0x7   : > { %p134_p3 = scmp.lt.s32.totalorder %s2261_s18, 3  ;;  %s2263_s22 = smov [#allocation9]  }
   0x8   : > { %p2330_p5 = por %p2777_p1, %p39_p0  ;;  %s146_s23 = sshll.u32 %s2263_s22, 4  ;;  %s147_s23 = int_to_ptr.vmem [resolvable:$true] %s146_s23 }
   0x9   : > { %p2334_p6 = pnand %p1615_p2, %p134_p3  ;;  %s2264_s25 = smov [#allocation11]  }
   0xa   : > { %s2780_s20 = scalar_select %p2330_p5, 1, 0 }
   0xb   : > { %s2781_s21 = scalar_select %p2334_p6, 1, 0 }
   0xc   : > { %p1917_p7 = pneg %p2334_p6  ;;  %s159_s26 = sshll.u32 %s2264_s25, 4  ;;  %s160_s26 = int_to_ptr.vmem [resolvable:$true] %s159_s26 }
   0xd   : > { %s2126_s27 = scalar_lea.vmem %s147_s23, 256  ;;  %p2134_p13 = scmp.lt.s32.totalorder %s147_s23, %s147_s23 }
   0xe   : > { %p2342_p8 = pnand %p1917_p7, %p2777_p1  ;;  %p2127_p10 = scmp.ne.s32.totalorder %s147_s23, %s2126_s27 }
   0xf   : > { %p2135_p0 = scmp.lt.s32.totalorder %s2126_s27, %s2126_s27 }
  0x10   : > { %p2117_p9 = pneg %p2342_p8 }
  0x11   : > { %p2136_p2 = por %p2135_p0, %p2134_p13 }
  0x12   : > { %p2129_p11 = pnand %p2127_p10, %p2117_p9 }
  0x14   : > { %p2130_p12 = pneg %p2129_p11 }
  0x16   : > { %p2137_p3 = pnand %p2136_p2, %p2130_p12 }
  0x18   : > { %2140 = shalt.err (!%p2137_p3)
}
  0x19   : > { %s2265_s28 = smov 64   ;;  %s2266_s29 = smov 4  }
  0x1a   : > { %1920 = dma.hbm_to_vmem [thread:$0]  (!%p2342_p8), %s2773_s1, 256, %s147_s23, [#allocation10], %s2265_s28, %s2265_s28, %s2266_s29  }
  0x1b   : > { %s2152_s6 = scalar_lea.vmem %s160_s26, 512  ;;  %p2160_p4 = scmp.lt.s32.totalorder %s160_s26, %s160_s26 }
  0x1c   : > { %p2153_p7 = scmp.ne.s32.totalorder %s160_s26, %s2152_s6  ;;  %p2161_p1 = scmp.lt.s32.totalorder %s2152_s6, %s2152_s6 }
  0x1e   : > { %p2155_p10 = pnand %p2153_p7, %p2117_p9  ;;  %p2162_p13 = por %p2161_p1, %p2160_p4 }
  0x20   : > { %p2156_p11 = pneg %p2155_p10 }
  0x22   : > { %p2163_p12 = pnand %p2162_p13, %p2156_p11 }
  0x24   : > { %2166 = shalt.err (!%p2163_p12)
}
  0x25   : > { %1923 = dma.hbm_to_vmem [thread:$0]  (!%p2342_p8), %s2774_s2, 512, %s160_s26, [#allocation10], %s2265_s28, %s2265_s28, %s2266_s29  }
  0x26   : > { %s2365_s9 = sadd.s32 1, %s2261_s18   ;;  %s26_s10 = sadd.s32 1, %s2257_s17 }
  0x27   : > { %s23_s11 = ssub.s32 %s2261_s18, %s2365_s9  ;;  %p33_p1 = scmp.ne.s32.totalorder %s2257_s17, %s2253_s16 }
  0x28   : > { %p24_p4 = scmp.eq.s32.totalorder %s23_s11, 0  ;;  %p34_p9 = scmp.eq.s32.totalorder %s2261_s18, 0 }
  0x29   : > { %p1930_p0 = scmp.lt.s32.totalorder %s2261_s18, 2  ;;  %s176_s12 = sand.u32 1, %s2257_s17  }
  0x2a   : > { %s2376_s13 = scalar_select %p24_p4, %s2257_s17, %s26_s10  }
  0x2b   : > { %p35_p2 = por %p34_p9, %p33_p1  ;;  %s1619_s14 = sshll.u32 %s176_s12, 6 }
  0x2c   : > { %s1678_s15 = sshll.u32 %s2261_s18, 10  ;;  %s180_s25 = scalar_lea.vmem [#allocation6], %s1619_s14 }
  0x2d   : > { %s2382_s24 = scalar_lea.hbm %s2772_s0, %s1678_s15  ;;  %s187_s26 = sshll.u32 %s180_s25, 4  ;;  %s2388_s26 = int_to_ptr.vmem [resolvable:$true] %s187_s26 }
  0x2e   : > { %p2384_p8 = pnand %p1930_p0, %p35_p2  ;;  %s2390_s28 = scalar_lea.sflag [#allocation7], %s176_s12 }
  0x2f   : > { %s2167_s18 = scalar_lea.hbm %s2382_s24, 1024  ;;  %s2172_s5 = scalar_lea.hbm %s2772_s0, 2048 }
  0x30   : > { %p2168_p3 = scmp.ne.s32.totalorder %s2382_s24, %s2167_s18  ;;  %p2169_p7 = pneg %p2384_p8 }
  0x31   : > { %p2173_p13 = scmp.lt.s32.totalorder %s2382_s24, %s2772_s0  ;;  %p2174_p12 = scmp.lt.s32.totalorder %s2172_s5, %s2167_s18 }
  0x32   : > { %p2170_p10 = pnand %p2169_p7, %p2168_p3 }
  0x33   : > { %p2175_p1 = por %p2174_p12, %p2173_p13 }
  0x34   : > { %p2171_p11 = pneg %p2170_p10 }
  0x36   : > { %p2176_p4 = pnand %p2175_p1, %p2171_p11 }
  0x38   : > { %2179 = shalt.err (!%p2176_p4)
}
  0x39   : > { %s2180_s8 = scalar_lea.vmem %s2388_s26, 1024  ;;  %s2267_s10 = smov [#allocation6]  }
  0x3a   : > { %p2181_p9 = scmp.ne.s32.totalorder %s2388_s26, %s2180_s8  ;;  %s2185_s11 = sshll.u32 %s2267_s10, 4  ;;  %s2186_s11 = int_to_ptr.vmem [resolvable:$false] %s2185_s11 }
  0x3b   : > { %s2187_s12 = scalar_lea.vmem %s2186_s11, 2048  ;;  %p2188_p3 = scmp.lt.s32.totalorder %s2388_s26, %s2186_s11 }
  0x3c   : > { %p2183_p0 = pnand %p2181_p9, %p2169_p7  ;;  %p2189_p10 = scmp.lt.s32.totalorder %s2187_s12, %s2180_s8 }
  0x3e   : > { %p2184_p2 = pneg %p2183_p0  ;;  %p2190_p5 = por %p2189_p10, %p2188_p3 }
  0x40   : > { %p2191_p6 = pnand %p2190_p5, %p2184_p2 }
  0x42   : > { %2194 = shalt.err (!%p2191_p6)
}
  0x43   : > { %s2268_s14 = smov 128   ;;  %s2269_s15 = smov 8  }
  0x44   : > { %1927 = dma.hbm_to_vmem [thread:$0]  (!%p2384_p8), %s2382_s24, 1024, %s2388_s26, %s2390_s28, %s2268_s14, %s2268_s14, %s2269_s15  }
  0x45   : > { %p2784_p7 = scmp.ne.s32.totalorder %s2781_s21, 0 }
  0x46   : > { %s201_s22 = sand.u32 (!%p2784_p7), 1, %s2253_s16   ;;  %p2785_p5 = scmp.ne.s32.totalorder (!%p2784_p7), %s2780_s20, 0 }
  0x47   : > { %199 = sbr.rel (%p2784_p7) target bundleno = 6348 (0x18cc), region = 36  ;;  %s1623_s23 = sshll.u32 (!%p2784_p7), %s201_s22, 6 }
  0x48   : > { %s202_s25 = scalar_lea.sflag (!%p2784_p7), [#allocation7], %s201_s22  ;;  %s2414_s18 = scalar_lea.vmem (!%p2784_p7), [#allocation6], %s1623_s23 }
  0x4c   : > { %2236 = dma.done.wait (%p2785_p5), %s202_s25, 1024  }
  0x4d   : > { %2238 = vsyncadd (%p2785_p5), %s202_s25, 4294966272  ;;  %p2786_p6 = scmp.eq.s32.totalorder %s2321_s19, 0 }
  0x4f   : > { %2240 = dma.done.wait (%p2786_p6), [#allocation10], 768   ;;  %p2787_p8 = pmov %p2786_p6 }
  0x50   : > { %p2788_p11 = scmp.ne.s32.totalorder %s2321_s19, 0 }
  0x51   : > { %2242 = vsyncadd (%p2787_p8), [#allocation10], 4294966528 }
  0x52   : > { %238 = sbr.rel (%p2788_p11) target bundleno = 90 (0x5a), region = 52 }
  0x57   : > { %vm239_vm0 = vcmask 261120   ;;  %v2270_v0 = vmov 0.0  }
  0x58   : > { %240 = vst.msk [vmem:[#allocation2] sm:$0xff] %vm239_vm0, %v2270_v0  ;;  %241 = vst.msk [vmem:[#allocation3] sm:$0xff] %vm239_vm0, %v2270_v0 }
  0x59   : > { %242 = vst.msk [vmem:[#allocation4] sm:$0xff] %vm239_vm0, %v2270_v0  ;;  %243 = vst.msk [vmem:[#allocation5] sm:$0xff] %vm239_vm0, %v2270_v0 }
  0x5a PF: > { %v2426_v1 = vld [vmem:[#allocation9 + $0x8] sm:$0xff]   ;;  %v2271_v2 = vmov 0.0   ;;  %v2431_v3 = vld [vmem:[#allocation9] sm:$0xff]   ;;  %vm2272_vm1 = vmmov 0   ;;  %vm275_vm2 = vcmask 261120   ;;  %s2273_s20 = smov 32  }
  0x5b   : > { %1743 = vmatprep.subr.bf16.mxu1 %v2271_v2  ;;  %1763 = vmatprep.subr.bf16.mxu0 %v2271_v2  ;;  %v261_v6 = vld [vmem:[%s2414_s18] sm:$0xff]  ;;  %v2454_v24 = vld [vmem:[#allocation11 + $0x18] sm:$0xff]   ;;  %v2461_v27 = vld [vmem:[#allocation11 + $0x8] sm:$0xff]   ;;  %s2274_s21 = smov 64   ;;  %vm388_vm3 = vcmask 523264   ;;  %s2275_s27 = smov 96  }
  0x5c   : > { %1744 = vmatpush3.bf16.msra.mxu1 %v2426_v1  ;;  %1747 = vmatprep.mubr.msk.bf16.mxu1 %vm2272_vm1, %v2271_v2  ;;  %v2457_v25 = vld [vmem:[#allocation11 + $0x10] sm:$0xff]   ;;  %v2468_v29 = vld [vmem:[#allocation11] sm:$0xff]   ;;  %v1638_v39 = vld [vmem:[%s2414_s18 + $0x8] sm:$0xff]  ;;  %p1673_p13 = scmp.ne.s32.totalorder %s2321_s19, 1 }
  0x5d   : > { %1745 = vmatprep.subr.bf16.mxu1 %v2271_v2  ;;  %1764 = vmatpush3.bf16.msra.mxu0 %v2426_v1  ;;  %v2496_v38 = vld [vmem:[%s2775_s3] ss:$0 sm:$0xff] }
  0x5e   : > { %1765 = vmatprep.subr.bf16.mxu0 %v2271_v2  ;;  %1767 = vmatprep.mubr.msk.bf16.mxu0 %vm2272_vm1, %v2271_v2 }
  0x5f   : > { %v257_v4 = vld [vmem:[#allocation2] sm:$0xff]  ;;  %v258_v13 = vld [vmem:[#allocation3] sm:$0xff] }
  0x60   : > { %v262_v5 = vpack.c.bf16 %v257_v4, %v257_v4  ;;  %1746 = vmatpush3.bf16.msra.mxu1 %v2431_v3  ;;  %v259_v28 = vld [vmem:[#allocation4] sm:$0xff]  ;;  %v260_v52 = vld [vmem:[#allocation5] sm:$0xff] }
  0x61   : > { %1751 = vmatprep.subr.bf16.mxu1 %v2271_v2  ;;  %1766 = vmatpush3.bf16.msra.mxu0 %v2431_v3 }
  0x62   : > { %1771 = vmatprep.subr.bf16.mxu0 %v2271_v2 }
  0x63   : > { %1748 = vmatmul.mubr.msk.bf16.vlgmr.msra.gmra.mxu1 %vm275_vm2, %v262_v5 }
  0x64   : > { %1759 = vmatprep.mubr.msk.bf16.mxu1 %vm2272_vm1, %v2271_v2  ;;  %1752 = vmatpush3.bf16.msra.mxu1 %v2454_v24 }
  0x65   : > { %1753 = vmatprep.subr.bf16.mxu1 %v2271_v2 }
  0x68   : > { %1754 = vmatpush3.bf16.msra.mxu1 %v2457_v25 }
  0x69   : > { %1755 = vmatprep.subr.bf16.mxu1 %v2271_v2 }
  0x6c   : > { %1756 = vmatpush3.bf16.msra.mxu1 %v2461_v27 }
  0x6d   : > { %1757 = vmatprep.subr.bf16.mxu1 %v2271_v2 }
  0x70   : > { %1758 = vmatpush3.bf16.msra.mxu1 %v2468_v29 }
  0x71   : > { %1783 = vmatprep.subr.bf16.mxu1 %v2271_v2 }
 0x123   : > { %v313_v7 = vpop.f32.mrf.mxu1 }
 0x124   : > { %v319_v8 = vadd.f32 %v313_v7, %v261_v6 }
 0x125   : > { %v1749_v9 = vpop.f32.mrf.mxu1 }
 0x126   : > { %1986 = vtanh.f32 %v319_v8  ;;  %v1630_v14 = vmul.f32 -1.442695, %v319_v8 }
 0x127   : > { %v316_v10 = vpop.f32.mrf.mxu1 }
 0x128   : > { %1988 = vpow2.f32 %v1630_v14 }
 0x129   : > { %v1750_v11 = vpop.f32.mrf.mxu1 }
 0x133   : > { %v1987_v12 = vpop.eup %1986 }
 0x134   : > { %333 = vrot.lane.b32.xlu0 %v1987_v12, %s2273_s20 }
 0x135   : > { %v1989_v15 = vpop.eup %1988 }
 0x136   : > { %v323_v16 = vadd.f32 1.0, %v1989_v15 }
 0x138   : > { %328 = vrot.lane.b32.xlu0 %v258_v13, %s2273_s20  ;;  %1990 = vrcp.f32 %v323_v16 }
 0x145   : > { %v1991_v17 = vpop.eup %1990 }
 0x1a6   : > { %v334_v18 = vpop.permute.xlu0 %333 }
 0x1a7   : > { %v336_v19 = vmul.f32 %v1991_v17, %v334_v18 }
 0x1a9   : > { %338 = vrot.lane.b32.xlu1 %v336_v19, %s2273_s20 }
 0x1aa   : > { %v329_v20 = vpop.permute.xlu0 %328 }
 0x1ab   : > { %v331_v21 = vmul.f32 %v1991_v17, %v329_v20 }
 0x21b   : > { %v339_v22 = vpop.permute.xlu1 %338 }
 0x21c   : > { %v2451_v23 = vadd.f32 %v339_v22, %v331_v21 }
 0x21e   : > { %1992 = vtanh.f32 %v2451_v23 }
 0x22b   : > { %v1993_v26 = vpop.eup %1992 }
 0x22c   : > { %344 = vrot.lane.b32.xlu1 %v1993_v26, %s2273_s20 }
 0x230   : > { %353 = vrot.lane.b32.xlu1 %v259_v28, %s2273_s20 }
 0x29e   : > { %v345_v30 = vpop.permute.xlu1 %344 }
 0x29f   : > { %v347_v31 = vmul.f32 %v1991_v17, %v345_v30 }
 0x2a1   : > { %349 = vrot.lane.b32.xlu0 %v347_v31, %s2274_s21  ;;  %v462_v32 = vpack.c.bf16 %v347_v31, %v347_v31 }
 0x2a2   : > { %v354_v33 = vpop.permute.xlu1 %353 }
 0x2a5   : > { %464 = vrot.lane.b32.xlu0 %v462_v32, %s2274_s21 }
 0x313   : > { %v350_v34 = vpop.permute.xlu0 %349 }
 0x314   : > { %v356_v35 = vsel %vm275_vm2, %v350_v34, %v354_v33 }
 0x315   : > { %v357_v36 = vpack.c.bf16 %v356_v35, %v356_v35 }
 0x317   : > { %v465_v37 = vpop.permute.xlu0 %464  ;;  %1760 = vmatmul.mubr.msk.bf16.vlgmr.msra.gmra.mxu1 %vm388_vm3, %v357_v36 }
 0x318   : > { %1768 = vmatmul.mubr.msk.bf16.vlgmr.msra.gmra.mxu0 %vm275_vm2, %v465_v37  ;;  %1784 = vmatpush3.bf16.msra.mxu1 %v2426_v1 }
 0x319   : > { %1772 = vmatpush3.bf16.msra.mxu0 %v2454_v24  ;;  %1785 = vmatprep.subr.bf16.mxu1 %v2271_v2 }
 0x31a   : > { %1773 = vmatprep.subr.bf16.mxu0 %v2271_v2  ;;  %1779 = vmatprep.mubr.msk.bf16.mxu0 %vm2272_vm1, %v2271_v2 }
 0x31b   : > { %1787 = vmatprep.mubr.msk.bf16.mxu1 %vm2272_vm1, %v2271_v2 }
 0x31c   : > { %1786 = vmatpush3.bf16.msra.mxu1 %v2431_v3 }
 0x31d   : > { %1774 = vmatpush3.bf16.msra.mxu0 %v2457_v25  ;;  %1791 = vmatprep.subr.bf16.mxu1 %v2271_v2 }
 0x31e   : > { %1775 = vmatprep.subr.bf16.mxu0 %v2271_v2 }
 0x321   : > { %1776 = vmatpush3.bf16.msra.mxu0 %v2461_v27 }
 0x322   : > { %1777 = vmatprep.subr.bf16.mxu0 %v2271_v2 }
 0x325   : > { %1778 = vmatpush3.bf16.msra.mxu0 %v2468_v29 }
 0x326   : > { %1803 = vmatprep.subr.bf16.mxu0 %v2271_v2 }
 0x3d7   : > { %v426_v40 = vpop.f32.mrf.mxu1 }
 0x3d8   : > { %v427_v41 = vadd.f32 %v2496_v38, %v426_v40  ;;  %v503_v42 = vpop.f32.mrf.mxu0 }
 0x3d9   : > { %v509_v43 = vadd.f32 %v1638_v39, %v503_v42  ;;  %v1761_v44 = vpop.f32.mrf.mxu1 }
 0x3da   : > { %1994 = vtanh.f32 %v427_v41  ;;  %v1769_v45 = vpop.f32.mrf.mxu0  ;;  %v1637_v53 = vmul.f32 -1.442695, %v427_v41 }
 0x3db   : > { %1996 = vtanh.f32 %v509_v43  ;;  %v429_v46 = vpop.f32.mrf.mxu1  ;;  %v1640_v54 = vmul.f32 -1.442695, %v509_v43 }
 0x3dc   : > { %v506_v47 = vpop.f32.mrf.mxu0  ;;  %1998 = vpow2.f32 %v1637_v53 }
 0x3dd   : > { %v1762_v48 = vpop.f32.mrf.mxu1  ;;  %2000 = vpow2.f32 %v1640_v54 }
 0x3de   : > { %v1770_v49 = vpop.f32.mrf.mxu0 }
 0x3e7   : > { %v1995_v50 = vpop.eup %1994 }
 0x3e8   : > { %v1997_v51 = vpop.eup %1996  ;;  %445 = vrot.lane.b32.xlu1 %v1995_v50, %s2273_s20 }
 0x3e9   : > { %519 = vrot.lane.b32.xlu0 %v1997_v51, %s2273_s20  ;;  %v1999_v55 = vpop.eup %1998 }
 0x3ea   : > { %v2001_v56 = vpop.eup %2000  ;;  %v435_v57 = vadd.f32 1.0, %v1999_v55 }
 0x3eb   : > { %v513_v58 = vadd.f32 1.0, %v2001_v56 }
 0x3ec   : > { %440 = vrot.lane.b32.xlu1 %v260_v52, %s2273_s20  ;;  %2002 = vrcp.f32 %v435_v57 }
 0x3ed   : > { %2004 = vrcp.f32 %v513_v58 }
 0x3f9   : > { %v2003_v59 = vpop.eup %2002 }
 0x3fa   : > { %v2005_v61 = vpop.eup %2004 }
 0x3fb   : > { %v517_v7 = vmul.f32 %v2005_v61, %v2451_v23  ;;  %v1643_v23 = vld [vmem:[%s2414_s18 + $0x10] sm:$0xff] }
 0x45a   : > { %v446_v60 = vpop.permute.xlu1 %445 }
 0x45b   : > { %v448_v62 = vmul.f32 %v2003_v59, %v446_v60  ;;  %v520_v63 = vpop.permute.xlu0 %519 }
 0x45c   : > { %v522_v0 = vmul.f32 %v2005_v61, %v520_v63 }
 0x45d   : > { %450 = vrot.lane.b32.xlu0 %v448_v62, %s2273_s20 }
 0x45e   : > { %524 = vrot.lane.b32.xlu1 %v522_v0, %s2273_s20  ;;  %v441_v4 = vpop.permute.xlu1 %440 }
 0x45f   : > { %v443_v5 = vmul.f32 %v2003_v59, %v441_v4 }
 0x4cf   : > { %v451_v6 = vpop.permute.xlu0 %450 }
 0x4d0   : > { %v2506_v8 = vadd.f32 %v451_v6, %v443_v5  ;;  %v525_v9 = vpop.permute.xlu1 %524 }
 0x4d1   : > { %v2508_v10 = vadd.f32 %v525_v9, %v517_v7 }
 0x4d2   : > { %2006 = vtanh.f32 %v2506_v8 }
 0x4d3   : > { %2008 = vtanh.f32 %v2508_v10 }
 0x4df   : > { %v2007_v11 = vpop.eup %2006 }
 0x4e0   : > { %v2009_v12 = vpop.eup %2008  ;;  %456 = vrot.lane.b32.xlu0 %v2007_v11, %s2273_s20 }
 0x4e1   : > { %530 = vrot.lane.b32.xlu1 %v2009_v12, %s2273_s20 }
 0x552   : > { %v457_v13 = vpop.permute.xlu0 %456 }
 0x553   : > { %v459_v14 = vmul.f32 %v2003_v59, %v457_v13  ;;  %v531_v15 = vpop.permute.xlu1 %530 }
 0x554   : > { %v533_v16 = vmul.f32 %v2005_v61, %v531_v15 }
 0x555   : > { %539 = vrot.lane.b32.xlu1 %v459_v14, %s2275_s27 }
 0x556   : > { %535 = vrot.lane.b32.xlu0 %v533_v16, %s2274_s21  ;;  %v613_v17 = vpack.c.bf16 %v533_v16, %v533_v16 }
 0x55a   : > { %615 = vrot.lane.b32.xlu0 %v613_v17, %s2274_s21 }
 0x5c7   : > { %v540_v18 = vpop.permute.xlu1 %539 }
 0x5c8   : > { %v536_v19 = vpop.permute.xlu0 %535 }
 0x5c9   : > { %v542_v20 = vsel %vm275_vm2, %v536_v19, %v540_v18 }
 0x5ca   : > { %v543_v21 = vpack.c.bf16 %v542_v20, %v542_v20 }
 0x5cc   : > { %1780 = vmatmul.mubr.msk.bf16.vlgmr.msra.gmra.mxu0 %vm388_vm3, %v543_v21  ;;  %v616_v22 = vpop.permute.xlu0 %615 }
 0x5cd   : > { %1788 = vmatmul.mubr.msk.bf16.vlgmr.msra.gmra.mxu1 %vm275_vm2, %v616_v22  ;;  %1804 = vmatpush3.bf16.msra.mxu0 %v2426_v1 }
 0x5ce   : > { %1792 = vmatpush3.bf16.msra.mxu1 %v2454_v24  ;;  %1805 = vmatprep.subr.bf16.mxu0 %v2271_v2 }
 0x5cf   : > { %1793 = vmatprep.subr.bf16.mxu1 %v2271_v2  ;;  %1799 = vmatprep.mubr.msk.bf16.mxu1 %vm2272_vm1, %v2271_v2 }
 0x5d0   : > { %1807 = vmatprep.mubr.msk.bf16.mxu0 %vm2272_vm1, %v2271_v2 }
 0x5d1   : > { %1806 = vmatpush3.bf16.msra.mxu0 %v2431_v3 }
 0x5d2   : > { %1794 = vmatpush3.bf16.msra.mxu1 %v2457_v25  ;;  %1811 = vmatprep.subr.bf16.mxu0 %v2271_v2 }
 0x5d3   : > { %1795 = vmatprep.subr.bf16.mxu1 %v2271_v2 }
 0x5d6   : > { %1796 = vmatpush3.bf16.msra.mxu1 %v2461_v27 }
 0x5d7   : > { %1797 = vmatprep.subr.bf16.mxu1 %v2271_v2 }
 0x5da   : > { %1798 = vmatpush3.bf16.msra.mxu1 %v2468_v29 }
 0x5db   : > { %1823 = vmatprep.subr.bf16.mxu1 %v2271_v2 }
 0x68c   : > { %v581_v26 = vpop.f32.mrf.mxu0 }
 0x68d   : > { %v582_v28 = vadd.f32 %v2496_v38, %v581_v26  ;;  %v654_v30 = vpop.f32.mrf.mxu1 }
 0x68e   : > { %v660_v31 = vadd.f32 %v1643_v23, %v654_v30  ;;  %v1781_v32 = vpop.f32.mrf.mxu0 }
 0x68f   : > { %2010 = vtanh.f32 %v582_v28  ;;  %v1789_v33 = vpop.f32.mrf.mxu1  ;;  %v1642_v41 = vmul.f32 -1.442695, %v582_v28 }
 0x690   : > { %2012 = vtanh.f32 %v660_v31  ;;  %v584_v34 = vpop.f32.mrf.mxu0  ;;  %v1645_v42 = vmul.f32 -1.442695, %v660_v31 }
 0x691   : > { %v657_v35 = vpop.f32.mrf.mxu1  ;;  %2014 = vpow2.f32 %v1642_v41 }
 0x692   : > { %v1782_v36 = vpop.f32.mrf.mxu0  ;;  %2016 = vpow2.f32 %v1645_v42 }
 0x693   : > { %v1790_v37 = vpop.f32.mrf.mxu1 }
 0x69c   : > { %v2011_v39 = vpop.eup %2010 }
 0x69d   : > { %v2013_v40 = vpop.eup %2012  ;;  %596 = vrot.lane.b32.xlu1 %v2011_v39, %s2273_s20 }
 0x69e   : > { %670 = vrot.lane.b32.xlu0 %v2013_v40, %s2273_s20  ;;  %v2015_v43 = vpop.eup %2014 }
 0x69f   : > { %v2017_v44 = vpop.eup %2016  ;;  %v590_v45 = vadd.f32 1.0, %v2015_v43 }
 0x6a0   : > { %v664_v46 = vadd.f32 1.0, %v2017_v44 }
 0x6a1   : > { %2018 = vrcp.f32 %v590_v45 }
 0x6a2   : > { %2020 = vrcp.f32 %v664_v46 }
 0x6ae   : > { %v2019_v47 = vpop.eup %2018 }
 0x6af   : > { %v2021_v49 = vpop.eup %2020  ;;  %v594_v53 = vmul.f32 %v2019_v47, %v2506_v8 }
 0x6b0   : > { %v668_v55 = vmul.f32 %v2021_v49, %v2508_v10  ;;  %v1648_v10 = vld [vmem:[%s2414_s18 + $0x18] sm:$0xff] }
 0x70f   : > { %v597_v48 = vpop.permute.xlu1 %596 }
 0x710   : > { %v599_v50 = vmul.f32 %v2019_v47, %v597_v48  ;;  %v671_v51 = vpop.permute.xlu0 %670 }
 0x711   : > { %v673_v52 = vmul.f32 %v2021_v49, %v671_v51 }
 0x712   : > { %601 = vrot.lane.b32.xlu1 %v599_v50, %s2273_s20 }
 0x713   : > { %675 = vrot.lane.b32.xlu0 %v673_v52, %s2273_s20 }
 0x784   : > { %v602_v54 = vpop.permute.xlu1 %601 }
 0x785   : > { %v2544_v56 = vadd.f32 %v602_v54, %v594_v53  ;;  %v676_v57 = vpop.permute.xlu0 %675 }
 0x786   : > { %v2546_v58 = vadd.f32 %v676_v57, %v668_v55 }
 0x787   : > { %2022 = vtanh.f32 %v2544_v56 }
 0x788   : > { %2024 = vtanh.f32 %v2546_v58 }
 0x794   : > { %v2023_v59 = vpop.eup %2022 }
 0x795   : > { %v2025_v60 = vpop.eup %2024  ;;  %607 = vrot.lane.b32.xlu1 %v2023_v59, %s2273_s20 }
 0x796   : > { %681 = vrot.lane.b32.xlu0 %v2025_v60, %s2273_s20 }
 0x807   : > { %v608_v61 = vpop.permute.xlu1 %607 }
 0x808   : > { %v610_v62 = vmul.f32 %v2019_v47, %v608_v61  ;;  %v682_v63 = vpop.permute.xlu0 %681 }
 0x809   : > { %v684_v0 = vmul.f32 %v2021_v49, %v682_v63 }
 0x80a   : > { %690 = vrot.lane.b32.xlu0 %v610_v62, %s2275_s27 }
 0x80b   : > { %686 = vrot.lane.b32.xlu1 %v684_v0, %s2274_s21  ;;  %v764_v4 = vpack.c.bf16 %v684_v0, %v684_v0 }
 0x80f   : > { %766 = vrot.lane.b32.xlu1 %v764_v4, %s2274_s21 }
 0x87c   : > { %v691_v5 = vpop.permute.xlu0 %690 }
 0x87d   : > { %v687_v6 = vpop.permute.xlu1 %686 }
 0x87e   : > { %v693_v7 = vsel %vm275_vm2, %v687_v6, %v691_v5 }
 0x87f   : > { %v694_v8 = vpack.c.bf16 %v693_v7, %v693_v7 }
 0x881   : > { %v767_v9 = vpop.permute.xlu1 %766  ;;  %1800 = vmatmul.mubr.msk.bf16.vlgmr.msra.gmra.mxu1 %vm388_vm3, %v694_v8 }
 0x882   : > { %1808 = vmatmul.mubr.msk.bf16.vlgmr.msra.gmra.mxu0 %vm275_vm2, %v767_v9  ;;  %1824 = vmatpush3.bf16.msra.mxu1 %v2426_v1 }
 0x883   : > { %1812 = vmatpush3.bf16.msra.mxu0 %v2454_v24  ;;  %1825 = vmatprep.subr.bf16.mxu1 %v2271_v2 }
 0x884   : > { %1813 = vmatprep.subr.bf16.mxu0 %v2271_v2  ;;  %1819 = vmatprep.mubr.msk.bf16.mxu0 %vm2272_vm1, %v2271_v2 }
 0x885   : > { %1827 = vmatprep.mubr.msk.bf16.mxu1 %vm2272_vm1, %v2271_v2 }
 0x886   : > { %1826 = vmatpush3.bf16.msra.mxu1 %v2431_v3 }
 0x887   : > { %1814 = vmatpush3.bf16.msra.mxu0 %v2457_v25  ;;  %1831 = vmatprep.subr.bf16.mxu1 %v2271_v2 }
 0x888   : > { %1815 = vmatprep.subr.bf16.mxu0 %v2271_v2 }
 0x88b   : > { %1816 = vmatpush3.bf16.msra.mxu0 %v2461_v27 }
 0x88c   : > { %1817 = vmatprep.subr.bf16.mxu0 %v2271_v2 }
 0x88f   : > { %1818 = vmatpush3.bf16.msra.mxu0 %v2468_v29 }
 0x890   : > { %1843 = vmatprep.subr.bf16.mxu0 %v2271_v2 }
 0x941   : > { %v732_v11 = vpop.f32.mrf.mxu1 }
 0x942   : > { %v733_v12 = vadd.f32 %v2496_v38, %v732_v11  ;;  %v805_v13 = vpop.f32.mrf.mxu0 }
 0x943   : > { %v811_v14 = vadd.f32 %v1648_v10, %v805_v13  ;;  %v1801_v15 = vpop.f32.mrf.mxu1 }
 0x944   : > { %2026 = vtanh.f32 %v733_v12  ;;  %v1809_v16 = vpop.f32.mrf.mxu0  ;;  %v1647_v23 = vmul.f32 -1.442695, %v733_v12 }
 0x945   : > { %2028 = vtanh.f32 %v811_v14  ;;  %v735_v17 = vpop.f32.mrf.mxu1  ;;  %v1650_v26 = vmul.f32 -1.442695, %v811_v14 }
 0x946   : > { %v808_v18 = vpop.f32.mrf.mxu0  ;;  %2030 = vpow2.f32 %v1647_v23 }
 0x947   : > { %v1802_v19 = vpop.f32.mrf.mxu1  ;;  %2032 = vpow2.f32 %v1650_v26 }
 0x948   : > { %v1810_v20 = vpop.f32.mrf.mxu0 }
 0x951   : > { %v2027_v21 = vpop.eup %2026 }
 0x952   : > { %v2029_v22 = vpop.eup %2028  ;;  %747 = vrot.lane.b32.xlu0 %v2027_v21, %s2273_s20 }
 0x953   : > { %821 = vrot.lane.b32.xlu1 %v2029_v22, %s2273_s20  ;;  %v2031_v28 = vpop.eup %2030 }
 0x954   : > { %v2033_v30 = vpop.eup %2032  ;;  %v741_v31 = vadd.f32 1.0, %v2031_v28 }
 0x955   : > { %v815_v32 = vadd.f32 1.0, %v2033_v30 }
 0x956   : > { %2034 = vrcp.f32 %v741_v31 }
 0x957   : > { %2036 = vrcp.f32 %v815_v32 }
 0x963   : > { %v2035_v33 = vpop.eup %2034 }
 0x964   : > { %v2037_v35 = vpop.eup %2036  ;;  %v745_v40 = vmul.f32 %v2035_v33, %v2544_v56 }
 0x965   : > { %v819_v42 = vmul.f32 %v2037_v35, %v2546_v58  ;;  %v1653_v58 = vld [vmem:[%s2414_s18 + $0x20] sm:$0xff] }
 0x9c4   : > { %v748_v34 = vpop.permute.xlu0 %747 }
 0x9c5   : > { %v750_v36 = vmul.f32 %v2035_v33, %v748_v34  ;;  %v822_v37 = vpop.permute.xlu1 %821 }
 0x9c6   : > { %v824_v39 = vmul.f32 %v2037_v35, %v822_v37 }
 0x9c7   : > { %752 = vrot.lane.b32.xlu0 %v750_v36, %s2273_s20 }
 0x9c8   : > { %826 = vrot.lane.b32.xlu1 %v824_v39, %s2273_s20 }
 0xa39   : > { %v753_v41 = vpop.permute.xlu0 %752 }
 0xa3a   : > { %v2582_v43 = vadd.f32 %v753_v41, %v745_v40  ;;  %v827_v44 = vpop.permute.xlu1 %826 }
 0xa3b   : > { %v2584_v45 = vadd.f32 %v827_v44, %v819_v42 }
 0xa3c   : > { %2038 = vtanh.f32 %v2582_v43 }
 0xa3d   : > { %2040 = vtanh.f32 %v2584_v45 }
 0xa49   : > { %v2039_v46 = vpop.eup %2038 }
 0xa4a   : > { %v2041_v47 = vpop.eup %2040  ;;  %758 = vrot.lane.b32.xlu0 %v2039_v46, %s2273_s20 }
 0xa4b   : > { %832 = vrot.lane.b32.xlu1 %v2041_v47, %s2273_s20 }
 0xabc   : > { %v759_v48 = vpop.permute.xlu0 %758 }
 0xabd   : > { %v761_v49 = vmul.f32 %v2035_v33, %v759_v48  ;;  %v833_v50 = vpop.permute.xlu1 %832 }
 0xabe   : > { %v835_v51 = vmul.f32 %v2037_v35, %v833_v50 }
 0xabf   : > { %841 = vrot.lane.b32.xlu1 %v761_v49, %s2275_s27 }
 0xac0   : > { %837 = vrot.lane.b32.xlu0 %v835_v51, %s2274_s21  ;;  %v915_v52 = vpack.c.bf16 %v835_v51, %v835_v51 }
 0xac4   : > { %917 = vrot.lane.b32.xlu0 %v915_v52, %s2274_s21 }
 0xb31   : > { %v842_v53 = vpop.permute.xlu1 %841 }
 0xb32   : > { %v838_v54 = vpop.permute.xlu0 %837 }
 0xb33   : > { %v844_v55 = vsel %vm275_vm2, %v838_v54, %v842_v53 }
 0xb34   : > { %v845_v56 = vpack.c.bf16 %v844_v55, %v844_v55 }
 0xb36   : > { %1820 = vmatmul.mubr.msk.bf16.vlgmr.msra.gmra.mxu0 %vm388_vm3, %v845_v56  ;;  %v918_v57 = vpop.permute.xlu0 %917 }
 0xb37   : > { %1828 = vmatmul.mubr.msk.bf16.vlgmr.msra.gmra.mxu1 %vm275_vm2, %v918_v57  ;;  %1844 = vmatpush3.bf16.msra.mxu0 %v2426_v1 }
 0xb38   : > { %1832 = vmatpush3.bf16.msra.mxu1 %v2454_v24  ;;  %1845 = vmatprep.subr.bf16.mxu0 %v2271_v2 }
 0xb39   : > { %1833 = vmatprep.subr.bf16.mxu1 %v2271_v2  ;;  %1839 = vmatprep.mubr.msk.bf16.mxu1 %vm2272_vm1, %v2271_v2 }
 0xb3a   : > { %1847 = vmatprep.mubr.msk.bf16.mxu0 %vm2272_vm1, %v2271_v2 }
 0xb3b   : > { %1846 = vmatpush3.bf16.msra.mxu0 %v2431_v3 }
 0xb3c   : > { %1834 = vmatpush3.bf16.msra.mxu1 %v2457_v25  ;;  %1851 = vmatprep.subr.bf16.mxu0 %v2271_v2 }
 0xb3d   : > { %1835 = vmatprep.subr.bf16.mxu1 %v2271_v2 }
 0xb40   : > { %1836 = vmatpush3.bf16.msra.mxu1 %v2461_v27 }
 0xb41   : > { %1837 = vmatprep.subr.bf16.mxu1 %v2271_v2 }
 0xb44   : > { %1838 = vmatpush3.bf16.msra.mxu1 %v2468_v29 }
 0xb45   : > { %1863 = vmatprep.subr.bf16.mxu1 %v2271_v2 }
 0xbf6   : > { %v883_v59 = vpop.f32.mrf.mxu0 }
 0xbf7   : > { %v884_v60 = vadd.f32 %v2496_v38, %v883_v59  ;;  %v956_v61 = vpop.f32.mrf.mxu1 }
 0xbf8   : > { %v962_v62 = vadd.f32 %v1653_v58, %v956_v61  ;;  %v1821_v63 = vpop.f32.mrf.mxu0 }
 0xbf9   : > { %2042 = vtanh.f32 %v884_v60  ;;  %v1829_v0 = vpop.f32.mrf.mxu1  ;;  %v1652_v10 = vmul.f32 -1.442695, %v884_v60 }
 0xbfa   : > { %2044 = vtanh.f32 %v962_v62  ;;  %v886_v4 = vpop.f32.mrf.mxu0  ;;  %v1655_v11 = vmul.f32 -1.442695, %v962_v62 }
 0xbfb   : > { %v959_v5 = vpop.f32.mrf.mxu1  ;;  %2046 = vpow2.f32 %v1652_v10 }
 0xbfc   : > { %v1822_v6 = vpop.f32.mrf.mxu0  ;;  %2048 = vpow2.f32 %v1655_v11 }
 0xbfd   : > { %v1830_v7 = vpop.f32.mrf.mxu1 }
 0xc06   : > { %v2043_v8 = vpop.eup %2042 }
 0xc07   : > { %v2045_v9 = vpop.eup %2044  ;;  %898 = vrot.lane.b32.xlu1 %v2043_v8, %s2273_s20 }
 0xc08   : > { %972 = vrot.lane.b32.xlu0 %v2045_v9, %s2273_s20  ;;  %v2047_v12 = vpop.eup %2046 }
 0xc09   : > { %v2049_v13 = vpop.eup %2048  ;;  %v892_v14 = vadd.f32 1.0, %v2047_v12 }
 0xc0a   : > { %v966_v15 = vadd.f32 1.0, %v2049_v13 }
 0xc0b   : > { %2050 = vrcp.f32 %v892_v14 }
 0xc0c   : > { %2052 = vrcp.f32 %v966_v15 }
 0xc18   : > { %v2051_v16 = vpop.eup %2050 }
 0xc19   : > { %v2053_v18 = vpop.eup %2052  ;;  %v896_v22 = vmul.f32 %v2051_v16, %v2582_v43 }
 0xc1a   : > { %v970_v26 = vmul.f32 %v2053_v18, %v2584_v45  ;;  %v1658_v45 = vld [vmem:[%s2414_s18 + $0x28] sm:$0xff] }
 0xc79   : > { %v899_v17 = vpop.permute.xlu1 %898 }
 0xc7a   : > { %v901_v19 = vmul.f32 %v2051_v16, %v899_v17  ;;  %v973_v20 = vpop.permute.xlu0 %972 }
 0xc7b   : > { %v975_v21 = vmul.f32 %v2053_v18, %v973_v20 }
 0xc7c   : > { %903 = vrot.lane.b32.xlu1 %v901_v19, %s2273_s20 }
 0xc7d   : > { %977 = vrot.lane.b32.xlu0 %v975_v21, %s2273_s20 }
 0xcee   : > { %v904_v23 = vpop.permute.xlu1 %903 }
 0xcef   : > { %v2620_v28 = vadd.f32 %v904_v23, %v896_v22  ;;  %v978_v30 = vpop.permute.xlu0 %977 }
 0xcf0   : > { %v2622_v31 = vadd.f32 %v978_v30, %v970_v26 }
 0xcf1   : > { %2054 = vtanh.f32 %v2620_v28 }
 0xcf2   : > { %2056 = vtanh.f32 %v2622_v31 }
 0xcfe   : > { %v2055_v32 = vpop.eup %2054 }
 0xcff   : > { %v2057_v33 = vpop.eup %2056  ;;  %909 = vrot.lane.b32.xlu1 %v2055_v32, %s2273_s20 }
 0xd00   : > { %983 = vrot.lane.b32.xlu0 %v2057_v33, %s2273_s20 }
 0xd71   : > { %v910_v34 = vpop.permute.xlu1 %909 }
 0xd72   : > { %v912_v35 = vmul.f32 %v2051_v16, %v910_v34  ;;  %v984_v36 = vpop.permute.xlu0 %983 }
 0xd73   : > { %v986_v37 = vmul.f32 %v2053_v18, %v984_v36 }
 0xd74   : > { %992 = vrot.lane.b32.xlu0 %v912_v35, %s2275_s27 }
 0xd75   : > { %988 = vrot.lane.b32.xlu1 %v986_v37, %s2274_s21  ;;  %v1066_v39 = vpack.c.bf16 %v986_v37, %v986_v37 }
 0xd79   : > { %1068 = vrot.lane.b32.xlu1 %v1066_v39, %s2274_s21 }
 0xde6   : > { %v993_v40 = vpop.permute.xlu0 %992 }
 0xde7   : > { %v989_v41 = vpop.permute.xlu1 %988 }
 0xde8   : > { %v995_v42 = vsel %vm275_vm2, %v989_v41, %v993_v40 }
 0xde9   : > { %v996_v43 = vpack.c.bf16 %v995_v42, %v995_v42 }
 0xdeb   : > { %v1069_v44 = vpop.permute.xlu1 %1068  ;;  %1840 = vmatmul.mubr.msk.bf16.vlgmr.msra.gmra.mxu1 %vm388_vm3, %v996_v43 }
 0xdec   : > { %1848 = vmatmul.mubr.msk.bf16.vlgmr.msra.gmra.mxu0 %vm275_vm2, %v1069_v44  ;;  %1864 = vmatpush3.bf16.msra.mxu1 %v2426_v1 }
 0xded   : > { %1852 = vmatpush3.bf16.msra.mxu0 %v2454_v24  ;;  %1865 = vmatprep.subr.bf16.mxu1 %v2271_v2 }
 0xdee   : > { %1853 = vmatprep.subr.bf16.mxu0 %v2271_v2  ;;  %1859 = vmatprep.mubr.msk.bf16.mxu0 %vm2272_vm1, %v2271_v2 }
 0xdef   : > { %1867 = vmatprep.mubr.msk.bf16.mxu1 %vm2272_vm1, %v2271_v2 }
 0xdf0   : > { %1866 = vmatpush3.bf16.msra.mxu1 %v2431_v3 }
 0xdf1   : > { %1854 = vmatpush3.bf16.msra.mxu0 %v2457_v25  ;;  %1871 = vmatprep.subr.bf16.mxu1 %v2271_v2 }
 0xdf2   : > { %1855 = vmatprep.subr.bf16.mxu0 %v2271_v2 }
 0xdf5   : > { %1856 = vmatpush3.bf16.msra.mxu0 %v2461_v27 }
 0xdf6   : > { %1857 = vmatprep.subr.bf16.mxu0 %v2271_v2 }
 0xdf9   : > { %1858 = vmatpush3.bf16.msra.mxu0 %v2468_v29 }
 0xdfa   : > { %1883 = vmatprep.subr.bf16.mxu0 %v2271_v2 }
 0xeab   : > { %v1034_v46 = vpop.f32.mrf.mxu1 }
 0xeac   : > { %v1035_v47 = vadd.f32 %v2496_v38, %v1034_v46  ;;  %v1107_v48 = vpop.f32.mrf.mxu0 }
 0xead   : > { %v1113_v49 = vadd.f32 %v1658_v45, %v1107_v48  ;;  %v1841_v50 = vpop.f32.mrf.mxu1 }
 0xeae   : > { %2058 = vtanh.f32 %v1035_v47  ;;  %v1849_v51 = vpop.f32.mrf.mxu0  ;;  %v1657_v58 = vmul.f32 -1.442695, %v1035_v47 }
 0xeaf   : > { %2060 = vtanh.f32 %v1113_v49  ;;  %v1037_v52 = vpop.f32.mrf.mxu1  ;;  %v1660_v59 = vmul.f32 -1.442695, %v1113_v49 }
 0xeb0   : > { %v1110_v53 = vpop.f32.mrf.mxu0  ;;  %2062 = vpow2.f32 %v1657_v58 }
 0xeb1   : > { %v1842_v54 = vpop.f32.mrf.mxu1  ;;  %2064 = vpow2.f32 %v1660_v59 }
 0xeb2   : > { %v1850_v55 = vpop.f32.mrf.mxu0 }
 0xebb   : > { %v2059_v56 = vpop.eup %2058 }
 0xebc   : > { %v2061_v57 = vpop.eup %2060  ;;  %1049 = vrot.lane.b32.xlu0 %v2059_v56, %s2273_s20 }
 0xebd   : > { %1123 = vrot.lane.b32.xlu1 %v2061_v57, %s2273_s20  ;;  %v2063_v60 = vpop.eup %2062 }
 0xebe   : > { %v2065_v61 = vpop.eup %2064  ;;  %v1043_v62 = vadd.f32 1.0, %v2063_v60 }
 0xebf   : > { %v1117_v63 = vadd.f32 1.0, %v2065_v61 }
 0xec0   : > { %2066 = vrcp.f32 %v1043_v62 }
 0xec1   : > { %2068 = vrcp.f32 %v1117_v63 }
 0xecd   : > { %v2067_v0 = vpop.eup %2066 }
 0xece   : > { %v2069_v5 = vpop.eup %2068  ;;  %v1047_v9 = vmul.f32 %v2067_v0, %v2620_v28 }
 0xecf   : > { %v1121_v11 = vmul.f32 %v2069_v5, %v2622_v31 }
 0xf2e   : > { %v1050_v4 = vpop.permute.xlu0 %1049 }
 0xf2f   : > { %v1052_v6 = vmul.f32 %v2067_v0, %v1050_v4  ;;  %v1124_v7 = vpop.permute.xlu1 %1123 }
 0xf30   : > { %v1126_v8 = vmul.f32 %v2069_v5, %v1124_v7 }
 0xf31   : > { %1054 = vrot.lane.b32.xlu0 %v1052_v6, %s2273_s20 }
 0xf32   : > { %1128 = vrot.lane.b32.xlu1 %v1126_v8, %s2273_s20 }
 0xfa3   : > { %v1055_v10 = vpop.permute.xlu0 %1054 }
 0xfa4   : > { %v2658_v12 = vadd.f32 %v1055_v10, %v1047_v9  ;;  %v1129_v13 = vpop.permute.xlu1 %1128 }
 0xfa5   : > { %v2660_v14 = vadd.f32 %v1129_v13, %v1121_v11 }
 0xfa6   : > { %2070 = vtanh.f32 %v2658_v12 }
 0xfa7   : > { %2072 = vtanh.f32 %v2660_v14 }
 0xfb3   : > { %v2071_v15 = vpop.eup %2070 }
 0xfb4   : > { %v2073_v16 = vpop.eup %2072  ;;  %1060 = vrot.lane.b32.xlu0 %v2071_v15, %s2273_s20 }
 0xfb5   : > { %1134 = vrot.lane.b32.xlu1 %v2073_v16, %s2273_s20 }
0x1026   : > { %v1061_v17 = vpop.permute.xlu0 %1060 }
0x1027   : > { %v1063_v18 = vmul.f32 %v2067_v0, %v1061_v17  ;;  %v1135_v19 = vpop.permute.xlu1 %1134 }
0x1028   : > { %v1137_v20 = vmul.f32 %v2069_v5, %v1135_v19 }
0x1029   : > { %1143 = vrot.lane.b32.xlu1 %v1063_v18, %s2275_s27 }
0x102a   : > { %1139 = vrot.lane.b32.xlu0 %v1137_v20, %s2274_s21  ;;  %v1217_v21 = vpack.c.bf16 %v1137_v20, %v1137_v20 }
0x102e   : > { %1219 = vrot.lane.b32.xlu0 %v1217_v21, %s2274_s21 }
0x109b   : > { %v1144_v22 = vpop.permute.xlu1 %1143 }
0x109c   : > { %v1140_v23 = vpop.permute.xlu0 %1139 }
0x109d   : > { %v1146_v26 = vsel %vm275_vm2, %v1140_v23, %v1144_v22 }
0x109e   : > { %v1147_v28 = vpack.c.bf16 %v1146_v26, %v1146_v26 }
0x10a0   : > { %1860 = vmatmul.mubr.msk.bf16.vlgmr.msra.gmra.mxu0 %vm388_vm3, %v1147_v28  ;;  %v1220_v30 = vpop.permute.xlu0 %1219 }
0x10a1   : > { %1868 = vmatmul.mubr.msk.bf16.vlgmr.msra.gmra.mxu1 %vm275_vm2, %v1220_v30  ;;  %1884 = vmatpush3.bf16.msra.mxu0 %v2426_v1  ;;  %v1663_v1 = vld [vmem:[%s2414_s18 + $0x30] sm:$0xff] }
0x10a2   : > { %1872 = vmatpush3.bf16.msra.mxu1 %v2454_v24  ;;  %1885 = vmatprep.subr.bf16.mxu0 %v2271_v2 }
0x10a3   : > { %1873 = vmatprep.subr.bf16.mxu1 %v2271_v2  ;;  %1879 = vmatprep.mubr.msk.bf16.mxu1 %vm2272_vm1, %v2271_v2 }
0x10a4   : > { %1887 = vmatprep.mubr.msk.bf16.mxu0 %vm2272_vm1, %v2271_v2 }
0x10a5   : > { %1886 = vmatpush3.bf16.msra.mxu0 %v2431_v3 }
0x10a6   : > { %1874 = vmatpush3.bf16.msra.mxu1 %v2457_v25  ;;  %1891 = vmatprep.subr.bf16.mxu0 %v2271_v2 }
0x10a7   : > { %1875 = vmatprep.subr.bf16.mxu1 %v2271_v2 }
0x10aa   : > { %1876 = vmatpush3.bf16.msra.mxu1 %v2461_v27 }
0x10ab   : > { %1877 = vmatprep.subr.bf16.mxu1 %v2271_v2 }
0x10ae   : > { %1878 = vmatpush3.bf16.msra.mxu1 %v2468_v29 }
0x1160   : > { %v1185_v31 = vpop.f32.mrf.mxu0 }
0x1161   : > { %v1186_v32 = vadd.f32 %v2496_v38, %v1185_v31  ;;  %v1258_v33 = vpop.f32.mrf.mxu1 }
0x1162   : > { %v1264_v34 = vadd.f32 %v1663_v1, %v1258_v33  ;;  %v1861_v35 = vpop.f32.mrf.mxu0 }
0x1163   : > { %2074 = vtanh.f32 %v1186_v32  ;;  %v1869_v3 = vpop.f32.mrf.mxu1  ;;  %v1662_v43 = vmul.f32 -1.442695, %v1186_v32 }
0x1164   : > { %2076 = vtanh.f32 %v1264_v34  ;;  %v1188_v36 = vpop.f32.mrf.mxu0  ;;  %v1665_v44 = vmul.f32 -1.442695, %v1264_v34 }
0x1165   : > { %v1261_v37 = vpop.f32.mrf.mxu1  ;;  %2078 = vpow2.f32 %v1662_v43 }
0x1166   : > { %v1862_v39 = vpop.f32.mrf.mxu0  ;;  %2080 = vpow2.f32 %v1665_v44 }
0x1167   : > { %v1870_v40 = vpop.f32.mrf.mxu1 }
0x1170   : > { %v2075_v41 = vpop.eup %2074 }
0x1171   : > { %v2077_v42 = vpop.eup %2076  ;;  %1200 = vrot.lane.b32.xlu1 %v2075_v41, %s2273_s20 }
0x1172   : > { %1274 = vrot.lane.b32.xlu0 %v2077_v42, %s2273_s20  ;;  %v2079_v45 = vpop.eup %2078 }
0x1173   : > { %v2081_v46 = vpop.eup %2080  ;;  %v1194_v47 = vadd.f32 1.0, %v2079_v45 }
0x1174   : > { %v1268_v48 = vadd.f32 1.0, %v2081_v46 }
0x1175   : > { %2082 = vrcp.f32 %v1194_v47 }
0x1176   : > { %2084 = vrcp.f32 %v1268_v48 }
0x1182   : > { %v2083_v49 = vpop.eup %2082 }
0x1183   : > { %v2085_v51 = vpop.eup %2084  ;;  %v1198_v55 = vmul.f32 %v2083_v49, %v2658_v12  ;;  %v1668_v12 = vld [vmem:[%s2414_s18 + $0x38] sm:$0xff] }
0x1184   : > { %v1272_v57 = vmul.f32 %v2085_v51, %v2660_v14 }
0x11e3   : > { %v1201_v50 = vpop.permute.xlu1 %1200 }
0x11e4   : > { %v1203_v52 = vmul.f32 %v2083_v49, %v1201_v50  ;;  %v1275_v53 = vpop.permute.xlu0 %1274 }
0x11e5   : > { %v1277_v54 = vmul.f32 %v2085_v51, %v1275_v53 }
0x11e6   : > { %1205 = vrot.lane.b32.xlu1 %v1203_v52, %s2273_s20 }
0x11e7   : > { %1279 = vrot.lane.b32.xlu0 %v1277_v54, %s2273_s20 }
0x1258   : > { %v1206_v56 = vpop.permute.xlu1 %1205 }
0x1259   : > { %v2695_v58 = vadd.f32 %v1206_v56, %v1198_v55  ;;  %v1280_v59 = vpop.permute.xlu0 %1279 }
0x125a   : > { %v2697_v60 = vadd.f32 %v1280_v59, %v1272_v57 }
0x125b   : > { %2086 = vtanh.f32 %v2695_v58 }
0x125c   : > { %2088 = vtanh.f32 %v2697_v60 }
0x1268   : > { %v2087_v61 = vpop.eup %2086 }
0x1269   : > { %v2089_v62 = vpop.eup %2088  ;;  %1211 = vrot.lane.b32.xlu1 %v2087_v61, %s2273_s20 }
0x126a   : > { %1285 = vrot.lane.b32.xlu0 %v2089_v62, %s2273_s20 }
0x12db   : > { %v1212_v63 = vpop.permute.xlu1 %1211 }
0x12dc   : > { %v1214_v0 = vmul.f32 %v2083_v49, %v1212_v63  ;;  %v1286_v4 = vpop.permute.xlu0 %1285 }
0x12dd   : > { %v1288_v5 = vmul.f32 %v2085_v51, %v1286_v4  ;;  %v2114_v51 = vld [vmem:[%s2775_s3] ss:$0 sm:$0xff] }
0x12de   : > { %1294 = vrot.lane.b32.xlu0 %v1214_v0, %s2275_s27 }
0x12df   : > { %1290 = vrot.lane.b32.xlu1 %v1288_v5, %s2274_s21  ;;  %v1368_v6 = vpack.c.bf16 %v1288_v5, %v1288_v5 }
0x12e3   : > { %1370 = vrot.lane.b32.xlu1 %v1368_v6, %s2274_s21 }
0x1350   : > { %v1295_v7 = vpop.permute.xlu0 %1294 }
0x1351   : > { %v1291_v8 = vpop.permute.xlu1 %1290 }
0x1352   : > { %v1297_v9 = vsel %vm275_vm2, %v1291_v8, %v1295_v7 }
0x1353   : > { %v1298_v10 = vpack.c.bf16 %v1297_v9, %v1297_v9 }
0x1355   : > { %v1371_v11 = vpop.permute.xlu1 %1370  ;;  %1880 = vmatmul.mubr.msk.bf16.vlgmr.msra.gmra.mxu1 %vm388_vm3, %v1298_v10 }
0x1356   : > { %1888 = vmatmul.mubr.msk.bf16.vlgmr.msra.gmra.mxu0 %vm275_vm2, %v1371_v11 }
0x1357   : > { %1892 = vmatpush3.bf16.msra.mxu0 %v2454_v24  ;;  %1899 = vmatprep.mubr.msk.bf16.mxu0 %vm2272_vm1, %v2271_v2 }
0x1358   : > { %1893 = vmatprep.subr.bf16.mxu0 %v2271_v2 }
0x135b   : > { %1894 = vmatpush3.bf16.msra.mxu0 %v2457_v25 }
0x135c   : > { %1895 = vmatprep.subr.bf16.mxu0 %v2271_v2 }
0x135f   : > { %1896 = vmatpush3.bf16.msra.mxu0 %v2461_v27 }
0x1360   : > { %1897 = vmatprep.subr.bf16.mxu0 %v2271_v2 }
0x1363   : > { %1898 = vmatpush3.bf16.msra.mxu0 %v2468_v29 }
0x1415   : > { %v1336_v13 = vpop.f32.mrf.mxu1 }
0x1416   : > { %v1337_v14 = vadd.f32 %v2496_v38, %v1336_v13  ;;  %v1409_v24 = vpop.f32.mrf.mxu0 }
0x1417   : > { %v1415_v15 = vadd.f32 %v1668_v12, %v1409_v24  ;;  %v1881_v16 = vpop.f32.mrf.mxu1 }
0x1418   : > { %2090 = vtanh.f32 %v1337_v14  ;;  %v1889_v17 = vpop.f32.mrf.mxu0  ;;  %v1667_v2 = vmul.f32 -1.442695, %v1337_v14 }
0x1419   : > { %2092 = vtanh.f32 %v1415_v15  ;;  %v1339_v18 = vpop.f32.mrf.mxu1  ;;  %v1670_v29 = vmul.f32 -1.442695, %v1415_v15 }
0x141a   : > { %v1412_v25 = vpop.f32.mrf.mxu0  ;;  %2094 = vpow2.f32 %v1667_v2 }
0x141b   : > { %v1882_v19 = vpop.f32.mrf.mxu1  ;;  %2096 = vpow2.f32 %v1670_v29 }
0x141c   : > { %v1890_v20 = vpop.f32.mrf.mxu0 }
0x1425   : > { %v2091_v21 = vpop.eup %2090 }
0x1426   : > { %v2093_v27 = vpop.eup %2092  ;;  %1351 = vrot.lane.b32.xlu0 %v2091_v21, %s2273_s20 }
0x1427   : > { %1425 = vrot.lane.b32.xlu1 %v2093_v27, %s2273_s20  ;;  %v2095_v38 = vpop.eup %2094 }
0x1428   : > { %v2097_v22 = vpop.eup %2096  ;;  %v1345_v23 = vadd.f32 1.0, %v2095_v38 }
0x1429   : > { %v1419_v26 = vadd.f32 1.0, %v2097_v22 }
0x142a   : > { %2098 = vrcp.f32 %v1345_v23 }
0x142b   : > { %2100 = vrcp.f32 %v1419_v26 }
0x1437   : > { %v2099_v28 = vpop.eup %2098 }
0x1438   : > { %v2101_v1 = vpop.eup %2100  ;;  %v1349_v34 = vmul.f32 %v2099_v28, %v2695_v58 }
0x1439   : > { %v1423_v3 = vmul.f32 %v2101_v1, %v2697_v60 }
0x1498   : > { %v1352_v30 = vpop.permute.xlu0 %1351 }
0x1499   : > { %v1354_v31 = vmul.f32 %v2099_v28, %v1352_v30  ;;  %v1426_v32 = vpop.permute.xlu1 %1425 }
0x149a   : > { %v1428_v33 = vmul.f32 %v2101_v1, %v1426_v32 }
0x149b   : > { %1356 = vrot.lane.b32.xlu0 %v1354_v31, %s2273_s20 }
0x149c   : > { %1430 = vrot.lane.b32.xlu1 %v1428_v33, %s2273_s20 }
0x150d   : > { %v1357_v35 = vpop.permute.xlu0 %1356 }
0x150e   : > { %v1359_v36 = vadd.f32 %v1357_v35, %v1349_v34  ;;  %v1431_v37 = vpop.permute.xlu1 %1430 }
0x150f   : > { %v1433_v39 = vadd.f32 %v1431_v37, %v1423_v3 }
0x1510   : > { %2102 = vtanh.f32 %v1359_v36 }
0x1511   : > { %2104 = vtanh.f32 %v1433_v39 }
0x151d   : > { %v2103_v40 = vpop.eup %2102 }
0x151e   : > { %v2105_v41 = vpop.eup %2104  ;;  %1362 = vrot.lane.b32.xlu0 %v2103_v40, %s2273_s20 }
0x151f   : > { %1436 = vrot.lane.b32.xlu1 %v2105_v41, %s2273_s20 }
0x1590   : > { %v1363_v42 = vpop.permute.xlu0 %1362 }
0x1591   : > { %v1365_v43 = vmul.f32 %v2099_v28, %v1363_v42  ;;  %v1437_v44 = vpop.permute.xlu1 %1436 }
0x1592   : > { %v1439_v45 = vmul.f32 %v2101_v1, %v1437_v44 }
0x1593   : > { %1445 = vrot.lane.b32.xlu1 %v1365_v43, %s2275_s27 }
0x1594   : > { %1441 = vrot.lane.b32.xlu0 %v1439_v45, %s2274_s21 }
0x1605   : > { %v1446_v46 = vpop.permute.xlu1 %1445 }
0x1606   : > { %v1442_v47 = vpop.permute.xlu0 %1441 }
0x1607   : > { %v1448_v48 = vsel %vm275_vm2, %v1442_v47, %v1446_v46  ;;  %1517 = vst.msk [vmem:[#allocation2] sm:$0xff] %vm275_vm2, %v1442_v47 }
0x1608   : > { %v1449_v49 = vpack.c.bf16 %v1448_v48, %v1448_v48 }
0x160a   : > { %1900 = vmatmul.mubr.msk.bf16.vlgmr.msra.gmra.mxu0 %vm388_vm3, %v1449_v49 }
0x16ca   : > { %v1487_v50 = vpop.f32.mrf.mxu0 }
0x16cb   : > { %v1488_v52 = vadd.f32 %v2114_v51, %v1487_v50 }
0x16cc   : > { %v1901_v53 = vpop.f32.mrf.mxu0 }
0x16cd   : > { %2106 = vtanh.f32 %v1488_v52  ;;  %v1672_v57 = vmul.f32 -1.442695, %v1488_v52 }
0x16ce   : > { %v1490_v54 = vpop.f32.mrf.mxu0 }
0x16cf   : > { %2108 = vpow2.f32 %v1672_v57 }
0x16d0   : > { %v1902_v55 = vpop.f32.mrf.mxu0 }
0x16da   : > { %v2107_v56 = vpop.eup %2106 }
0x16db   : > { %1502 = vrot.lane.b32.xlu0 %v2107_v56, %s2273_s20 }
0x16dc   : > { %v2109_v58 = vpop.eup %2108 }
0x16dd   : > { %v1496_v59 = vadd.f32 1.0, %v2109_v58 }
0x16df   : > { %2110 = vrcp.f32 %v1496_v59 }
0x16ec   : > { %v2111_v60 = vpop.eup %2110 }
0x16ed   : > { %v1500_v63 = vmul.f32 %v2111_v60, %v1359_v36 }
0x174d   : > { %v1503_v61 = vpop.permute.xlu0 %1502 }
0x174e   : > { %v1505_v62 = vmul.f32 %v2111_v60, %v1503_v61 }
0x1750   : > { %1507 = vrot.lane.b32.xlu1 %v1505_v62, %s2273_s20 }
0x1754   : > { %1519 = vrot.lane.b32.xlu1 %v1433_v39, %s2275_s27 }
0x17c2   : > { %v1508_v0 = vpop.permute.xlu1 %1507 }
0x17c3   : > { %v1510_v4 = vadd.f32 %v1508_v0, %v1500_v63 }
0x17c5   : > { %2112 = vtanh.f32 %v1510_v4  ;;  %1529 = vrot.lane.b32.xlu1 %v1510_v4, %s2275_s27 }
0x17c6   : > { %v1520_v5 = vpop.permute.xlu1 %1519 }
0x17c7   : > { %1522 = vst.msk [vmem:[#allocation3] sm:$0xff] %vm275_vm2, %v1520_v5 }
0x17d2   : > { %v2113_v6 = vpop.eup %2112 }
0x17d3   : > { %1513 = vrot.lane.b32.xlu0 %v2113_v6, %s2273_s20 }
0x1837   : > { %v1530_v7 = vpop.permute.xlu1 %1529 }
0x1838   : > { %1532 = vst.msk [vmem:[#allocation5] sm:$0xff] %vm275_vm2, %v1530_v7 }
0x1845   : > { %v1514_v8 = vpop.permute.xlu0 %1513 }
0x1846   : > { %v1516_v9 = vmul.f32 %v2111_v60, %v1514_v8 }
0x1848   : > { %1524 = vrot.lane.b32.xlu0 %v1516_v9, %s2274_s21 }
0x18b7   : > { %1536 = sbr.rel (%p1673_p13) target bundleno = 6333 (0x18bd), region = 56 }
0x18ba   : > { %v1525_v10 = vpop.permute.xlu0 %1524 }
0x18bb   : > { %1527 = vst.msk [vmem:[#allocation4] sm:$0xff] %vm275_vm2, %v1525_v10 }
0x18bc   : > { %1537 = vst.msk [vmem:[#allocation12] sm:$0xff] %vm275_vm2, %v1525_v10 }
0x18bd PF: > { %p1933_p12 = scmp.eq.s32.totalorder %s2321_s19, 1  ;;  %s2276_s30 = smov [#allocation12]  }
0x18be   : > { %s1545_s5 = sshll.u32 %s2276_s30, 4  ;;  %s1546_s5 = int_to_ptr.vmem [resolvable:$true] %s1545_s5 }
0x18bf   : > { %s2195_s6 = scalar_lea.vmem %s1546_s5, 128  ;;  %p2202_p0 = scmp.lt.s32.totalorder %s1546_s5, %s1546_s5 }
0x18c0   : > { %p2196_p1 = scmp.ne.s32.totalorder %s1546_s5, %s2195_s6  ;;  %p2203_p2 = scmp.lt.s32.totalorder %s2195_s6, %s2195_s6 }
0x18c2   : > { %p2197_p4 = pnand %p2196_p1, %p1933_p12  ;;  %p2204_p3 = por %p2203_p2, %p2202_p0 }
0x18c4   : > { %p2198_p9 = pneg %p2197_p4 }
0x18c6   : > { %p2205_p10 = pnand %p2204_p3, %p2198_p9 }
0x18c8   : > { %2208 = shalt.err (!%p2205_p10)
}
0x18c9   : > { %1914 = dma.vmem_to_hbm [thread:$0]  (%p1933_p12), %s1546_s5, 128, %s2776_s4, [#allocation8]  }
0x18ca   : > { %2244 = dma.done.wait (%p1933_p12), [#allocation8], 128  }
0x18cb   : > { %2246 = vsyncadd (%p1933_p12), [#allocation8], 4294967168 }
0x18cc PF: > { %p16_p7 = scmp.ge.s32.totalorder %s2365_s9, 4   ;;  %s2789_s15 = smov %s2253_s16 }
0x18cd   : > { %s2790_s16 = smov %s2257_s17  ;;  %s2791_s17 = smov %s2376_s13 }
0x18ce   : > { %s2792_s18 = smov %s2365_s9  ;;  %18 = sbr.rel (!%p16_p7) target bundleno = 5 (0x5), region = 96 }
0x18d3   :  { %1558 = vsyncpa [#allocation7], 1 }
0x18d4   :  { %1560 = vsyncpa [#allocation7 + $0x1], 1 }
0x18d5   :  { %1561 = vsyncpa [#allocation10], 1 }
0x18d6   :  { %1562 = vsyncpa [#allocation8], 1 }
0x18d7   :  { %1564 = vsyncpa [#allocation8 + $0x1], 1 }

</bundles_post_ra>
